<compile_context>
chip_gen: v5e
topology: v5e:2x2
jax: 0.10.0
libtpu: 0.0.40
codegen_flags: <defaults>
</compile_context>

<pallas_src>
import functools

import jax
import jax.numpy as jnp
from jax.experimental import pallas as pl
from jax.experimental.pallas import tpu as pltpu

EPS = 1e-5


# ----------------------------------------------------------------------------
# Fused BasicBlock kernel
# ----------------------------------------------------------------------------
def _block_kernel(*refs, H, W, stride, equal_in_out, compute_dtype):
    # refs = (x, s1, b1, w1, s2, b2, w2, [sc_w], out, pad1, pad2, col1, col2)
    if equal_in_out:
        (x_ref, s1_ref, b1_ref, w1_ref, s2_ref, b2_ref, w2_ref,
         o_ref, pad1_ref, pad2_ref, col1_ref, col2_ref) = refs
        scw_ref = None
    else:
        (x_ref, s1_ref, b1_ref, w1_ref, s2_ref, b2_ref, w2_ref, scw_ref,
         o_ref, pad1_ref, pad2_ref, col1_ref, col2_ref) = refs

    Ho, Wo = H // stride, W // stride
    cin = x_ref.shape[-1]
    cmid = w1_ref.shape[-1]
    cout = o_ref.shape[-1]
    taps = [(ky, kx) for ky in range(3) for kx in range(3)]

    # ---- bn1 + relu fused on the input tile (no separate HBM pass) --------
    x = x_ref[0]                                             # (H, W, Cin)
    a = jnp.maximum(x * s1_ref[...] + b1_ref[...], 0.0)

    # Zero-padded activation in VMEM scratch (zero halo, interior overwritten
    # every grid step so 'parallel' megacore split stays correct).
    pad1_ref[...] = jnp.zeros_like(pad1_ref)
    pad1_ref[1:H + 1, 1:W + 1, :] = a

    def tap1(ky, kx):
        # (Ho, Wo, Cin) window of the padded activation, stride-aware: for
        # stride > 1 only the needed output positions are loaded (strided read).
        if stride == 1:
            return pad1_ref[ky:ky + Ho, kx:kx + Wo, :]
        return pad1_ref[pl.ds(ky, Ho, stride=stride),
                        pl.ds(kx, Wo, stride=stride), :]

    # ---- conv1: im2col patch matrix, one MXU matmul (K = 9*Cin) -----------
    for t, (ky, kx) in enumerate(taps):
        col1_ref[:, t * cin:(t + 1) * cin] = tap1(ky, kx).reshape(Ho * Wo, cin)
    h = jnp.dot(col1_ref[...].astype(compute_dtype),
                w1_ref[...].astype(compute_dtype),
                preferred_element_type=jnp.float32)          # (Ho*Wo, Cmid)

    # ---- bn2 + relu fused ---------------------------------------------------
    h = jnp.maximum(h * s2_ref[...] + b2_ref[...], 0.0)
    # TODO(synk): dropout (F.dropout, dropRate>0) omitted - dropRate=0.0 / eval.

    # ---- conv2 (stride 1): im2col + one MXU matmul --------------------------
    pad2_ref[...] = jnp.zeros_like(pad2_ref)
    pad2_ref[1:Ho + 1, 1:Wo + 1, :] = h.reshape(Ho, Wo, cmid)
    for t, (ky, kx) in enumerate(taps):
        col2_ref[:, t * cmid:(t + 1) * cmid] = (
            pad2_ref[ky:ky + Ho, kx:kx + Wo, :].reshape(Ho * Wo, cmid))
    out = jnp.dot(col2_ref[...].astype(compute_dtype),
                  w2_ref[...].astype(compute_dtype),
                  preferred_element_type=jnp.float32)        # (Ho*Wo, Cout)

    # ---- shortcut + residual add fused into the epilogue --------------------
    if equal_in_out:
        out = out + x.reshape(Ho * Wo, cin)                  # identity shortcut
    else:
        sc_in = tap1(1, 1).reshape(Ho * Wo, cin)             # strided relu(bn1(x))
        out = out + jnp.dot(sc_in.astype(compute_dtype),
                            scw_ref[...].astype(compute_dtype),
                            preferred_element_type=jnp.float32)

    o_ref[0] = out.reshape(Ho, Wo, cout).astype(o_ref.dtype)


# ----------------------------------------------------------------------------
# Wrapper: one pallas_call per BasicBlock
# ----------------------------------------------------------------------------
def basic_block_fused(x_nhwc, p, stride, equal_in_out,
                      compute_dtype=jnp.float32):
    n, h, w, cin = x_nhwc.shape
    assert h % stride == 0 and w % stride == 0
    w1 = p["conv1_w"]                        # (3, 3, cin, cmid)  HWIO
    cmid = w1.shape[-1]
    w2 = p["conv2_w"]                        # (3, 3, cmid, cout)
    cout = w2.shape[-1]
    ho, wo = h // stride, w // stride
    if equal_in_out:
        assert stride == 1 and cin == cout

    # Fold inference BatchNorm into per-channel (scale, shift).
    s1 = p["bn1_gamma"] / jnp.sqrt(p["bn1_var"] + EPS)
    b1 = p["bn1_beta"] - p["bn1_mean"] * s1
    s2 = p["bn2_gamma"] / jnp.sqrt(p["bn2_var"] + EPS)
    b2 = p["bn2_beta"] - p["bn2_mean"] * s2

    w1m = w1.reshape(9 * cin, cmid)          # im2col weight layout (ky,kx,ci)
    w2m = w2.reshape(9 * cmid, cout)

    inputs = [x_nhwc, s1.reshape(1, cin), b1.reshape(1, cin), w1m,
              s2.reshape(1, cmid), b2.reshape(1, cmid), w2m]
    in_specs = [
        pl.BlockSpec((1, h, w, cin), lambda b: (b, 0, 0, 0)),
        pl.BlockSpec((1, cin), lambda b: (0, 0)),
        pl.BlockSpec((1, cin), lambda b: (0, 0)),
        pl.BlockSpec((9 * cin, cmid), lambda b: (0, 0)),
        pl.BlockSpec((1, cmid), lambda b: (0, 0)),
        pl.BlockSpec((1, cmid), lambda b: (0, 0)),
        pl.BlockSpec((9 * cmid, cout), lambda b: (0, 0)),
    ]
    if not equal_in_out:
        inputs.append(p["sc_w"])
        in_specs.append(pl.BlockSpec((cin, cout), lambda b: (0, 0)))

    kern = functools.partial(_block_kernel, H=h, W=w, stride=stride,
                             equal_in_out=equal_in_out,
                             compute_dtype=compute_dtype)

    return pl.pallas_call(
        kern,
        out_shape=jax.ShapeDtypeStruct((n, ho, wo, cout), jnp.float32),
        grid=(n,),
        in_specs=in_specs,
        out_specs=pl.BlockSpec((1, ho, wo, cout), lambda b: (b, 0, 0, 0)),
        scratch_shapes=[
            pltpu.VMEM((h + 2, w + 2, cin), jnp.float32),      # padded act, conv1
            pltpu.VMEM((ho + 2, wo + 2, cmid), jnp.float32),   # padded act, conv2
            pltpu.VMEM((ho * wo, 9 * cin), jnp.float32),       # im2col, conv1
            pltpu.VMEM((ho * wo, 9 * cmid), jnp.float32),      # im2col, conv2
        ],
        compiler_params=pltpu.CompilerParams(
            dimension_semantics=("parallel",)),
    )(*inputs)


def network_block_forward(x, layer_params, in_planes, out_planes, stride,
                          compute_dtype=jnp.float32):
    out = x
    for i, p in enumerate(layer_params):
        cin = in_planes if i == 0 else out_planes
        s = stride if i == 0 else 1
        out = basic_block_fused(out, p, s, cin == out_planes,
                                compute_dtype=compute_dtype)
    return out


# ----------------------------------------------------------------------------
# Parameter init (matches the PyTorch module's structure, HWIO conv weights)
# ----------------------------------------------------------------------------
def init_basic_block(key, cin, cout):
    ks = jax.random.split(key, 12)
    he1 = (2.0 / (9 * cin)) ** 0.5
    he2 = (2.0 / (9 * cout)) ** 0.5
    p = {
        "bn1_gamma": jax.random.uniform(ks[0], (cin,), jnp.float32, 0.5, 1.5),
        "bn1_beta": 0.1 * jax.random.normal(ks[1], (cin,), jnp.float32),
        "bn1_mean": 0.1 * jax.random.normal(ks[2], (cin,), jnp.float32),
        "bn1_var": jax.random.uniform(ks[3], (cin,), jnp.float32, 0.5, 1.5),
        "conv1_w": he1 * jax.random.normal(ks[4], (3, 3, cin, cout), jnp.float32),
        "bn2_gamma": jax.random.uniform(ks[5], (cout,), jnp.float32, 0.5, 1.5),
        "bn2_beta": 0.1 * jax.random.normal(ks[6], (cout,), jnp.float32),
        "bn2_mean": 0.1 * jax.random.normal(ks[7], (cout,), jnp.float32),
        "bn2_var": jax.random.uniform(ks[8], (cout,), jnp.float32, 0.5, 1.5),
        "conv2_w": he2 * jax.random.normal(ks[9], (3, 3, cout, cout), jnp.float32),
    }
    if cin != cout:
        p["sc_w"] = (2.0 / cin) ** 0.5 * jax.random.normal(
            ks[10], (cin, cout), jnp.float32)
    return p


# ----------------------------------------------------------------------------
# Pure-JAX reference (correctness check only)
# ----------------------------------------------------------------------------
def _ref_bnrelu(x, g, b, m, v):
    return jnp.maximum((x - m) / jnp.sqrt(v + EPS) * g + b, 0.0)


def _ref_conv3x3(x, w, stride):
    return jax.lax.conv_general_dilated(
        x, w, (stride, stride), ((1, 1), (1, 1)),
        dimension_numbers=("NHWC", "HWIO", "NHWC"))


def ref_network_block(x, layer_params, in_planes, out_planes, stride):
    out = x
    for i, p in enumerate(layer_params):
        cin = in_planes if i == 0 else out_planes
        s = stride if i == 0 else 1
        equal = cin == out_planes
        a = _ref_bnrelu(out, p["bn1_gamma"], p["bn1_beta"],
                        p["bn1_mean"], p["bn1_var"])
        h = _ref_conv3x3(a, p["conv1_w"], s)
        h = _ref_bnrelu(h, p["bn2_gamma"], p["bn2_beta"],
                        p["bn2_mean"], p["bn2_var"])
        h = _ref_conv3x3(h, p["conv2_w"], 1)
        sc = out if equal else jnp.einsum(
            "nhwc,cd->nhwd", a[:, ::s, ::s, :], p["sc_w"])
        out = h + sc
    return out


# ----------------------------------------------------------------------------
if __name__ == "__main__":
    # NetworkBlock(nb_layers=2, in_planes=4, out_planes=8, stride=2)
    nb_layers, in_planes, out_planes, stride = 2, 4, 8, 2
    N, H, W = 2, 16, 16

    key = jax.random.PRNGKey(0)
    kx, *kls = jax.random.split(key, 1 + nb_layers)

    x_nchw = jax.random.normal(kx, (N, in_planes, H, W), jnp.float32)
    x_nhwc = jnp.transpose(x_nchw, (0, 2, 3, 1))  # NCHW -> NHWC

    layer_params = []
    for i in range(nb_layers):
        cin = in_planes if i == 0 else out_planes
        layer_params.append(init_basic_block(kls[i], cin, out_planes))

    out = network_block_forward(x_nhwc, layer_params,
                                in_planes, out_planes, stride)
    out = jax.block_until_ready(out)

    ref = ref_network_block(x_nhwc, layer_params,
                            in_planes, out_planes, stride)
    assert out.shape == (N, H // stride, W // stride, out_planes), out.shape
    assert jnp.allclose(out, ref, atol=1e-4, rtol=1e-4), (
        float(jnp.max(jnp.abs(out - ref))))

    print("KERNEL_OK")
</pallas_src>

<mosaic_0001>
module attributes {stable_mosaic.version = 11 : i64} {
  func.func @_block_kernel(%arg0: i32, %arg1: memref<1x16x16x4xf32, #tpu.memory_space<vmem>>, %arg2: memref<1x4xf32, #tpu.memory_space<vmem>>, %arg3: memref<1x4xf32, #tpu.memory_space<vmem>>, %arg4: memref<36x8xf32, #tpu.memory_space<vmem>>, %arg5: memref<1x8xf32, #tpu.memory_space<vmem>>, %arg6: memref<1x8xf32, #tpu.memory_space<vmem>>, %arg7: memref<72x8xf32, #tpu.memory_space<vmem>>, %arg8: memref<4x8xf32, #tpu.memory_space<vmem>>, %arg9: memref<1x8x8x8xf32, #tpu.memory_space<vmem>>, %arg10: memref<18x18x4xf32, #tpu.memory_space<vmem>>, %arg11: memref<10x10x8xf32, #tpu.memory_space<vmem>>, %arg12: memref<64x36xf32, #tpu.memory_space<vmem>>, %arg13: memref<64x72xf32, #tpu.memory_space<vmem>>) attributes {dimension_semantics = [#tpu.dimension_semantics<parallel>], iteration_bounds = array<i64: 2>, scalar_prefetch = 0 : i64, scratch_operands = 4 : i64, tpu.core_type = #tpu.core_type<tc>, window_params = [{transform_indices = @transform_0, window_bounds = array<i64: 1, 16, 16, 4>}, {pipeline_mode = #tpu.pipeline_mode<synchronous>, transform_indices = @transform_1, window_bounds = array<i64: 1, 4>}, {pipeline_mode = #tpu.pipeline_mode<synchronous>, transform_indices = @transform_2, window_bounds = array<i64: 1, 4>}, {pipeline_mode = #tpu.pipeline_mode<synchronous>, transform_indices = @transform_3, window_bounds = array<i64: 36, 8>}, {pipeline_mode = #tpu.pipeline_mode<synchronous>, transform_indices = @transform_4, window_bounds = array<i64: 1, 8>}, {pipeline_mode = #tpu.pipeline_mode<synchronous>, transform_indices = @transform_5, window_bounds = array<i64: 1, 8>}, {pipeline_mode = #tpu.pipeline_mode<synchronous>, transform_indices = @transform_6, window_bounds = array<i64: 72, 8>}, {pipeline_mode = #tpu.pipeline_mode<synchronous>, transform_indices = @transform_7, window_bounds = array<i64: 4, 8>}, {transform_indices = @transform_8, window_bounds = array<i64: 1, 8, 8, 8>}]} {
    %c0 = arith.constant 0 : index
    %c0_0 = arith.constant 0 : index
    %c0_1 = arith.constant 0 : index
    %c0_2 = arith.constant 0 : index
    %0 = vector.load %arg1[%c0, %c0_0, %c0_1, %c0_2] : memref<1x16x16x4xf32, #tpu.memory_space<vmem>>, vector<1x16x16x4xf32>
    %1 = vector.shape_cast %0 : vector<1x16x16x4xf32> to vector<16x16x4xf32>
    %c0_3 = arith.constant 0 : index
    %c0_4 = arith.constant 0 : index
    %2 = vector.load %arg2[%c0_3, %c0_4] : memref<1x4xf32, #tpu.memory_space<vmem>>, vector<1x4xf32>
    %3 = vector.shape_cast %2 : vector<1x4xf32> to vector<1x1x4xf32>
    %4 = vector.broadcast %3 : vector<1x1x4xf32> to vector<16x16x4xf32>
    %5 = arith.mulf %1, %4 : vector<16x16x4xf32>
    %c0_5 = arith.constant 0 : index
    %c0_6 = arith.constant 0 : index
    %6 = vector.load %arg3[%c0_5, %c0_6] : memref<1x4xf32, #tpu.memory_space<vmem>>, vector<1x4xf32>
    %7 = vector.shape_cast %6 : vector<1x4xf32> to vector<1x1x4xf32>
    %8 = vector.broadcast %7 : vector<1x1x4xf32> to vector<16x16x4xf32>
    %9 = arith.addf %5, %8 : vector<16x16x4xf32>
    %cst = arith.constant 0.000000e+00 : f32
    %10 = vector.broadcast %cst : f32 to vector<16x16x4xf32>
    %11 = arith.maximumf %9, %10 : vector<16x16x4xf32>
    %cst_7 = arith.constant 0.000000e+00 : f32
    %12 = vector.broadcast %cst_7 : f32 to vector<18x18x4xf32>
    %c0_8 = arith.constant 0 : index
    %c0_9 = arith.constant 0 : index
    %c0_10 = arith.constant 0 : index
    %13 = vector.load %arg10[%c0_8, %c0_9, %c0_10] : memref<18x18x4xf32, #tpu.memory_space<vmem>>, vector<18x18x4xf32>
    tpu.vector_store %arg10[%c0_8, %c0_9, %c0_10], %12 {strides = array<i32>} : memref<18x18x4xf32, #tpu.memory_space<vmem>>, vector<18x18x4xf32>,
    %c1 = arith.constant 1 : index
    %c1_11 = arith.constant 1 : index
    %c0_12 = arith.constant 0 : index
    %14 = vector.load %arg10[%c1, %c1_11, %c0_12] : memref<18x18x4xf32, #tpu.memory_space<vmem>>, vector<16x16x4xf32>
    tpu.vector_store %arg10[%c1, %c1_11, %c0_12], %11 {strides = array<i32>} : memref<18x18x4xf32, #tpu.memory_space<vmem>>, vector<16x16x4xf32>,
    %c0_13 = arith.constant 0 : index
    %c0_14 = arith.constant 0 : index
    %c0_15 = arith.constant 0 : index
    %15 = tpu.strided_load %arg10[%c0_13, %c0_14, %c0_15] {strides = array<i32: 2, 2, 1>} : memref<18x18x4xf32, #tpu.memory_space<vmem>>, vector<8x8x4xf32>
    %16 = vector.shape_cast %15 : vector<8x8x4xf32> to vector<64x4xf32>
    %c0_16 = arith.constant 0 : index
    %c0_17 = arith.constant 0 : index
    %17 = vector.load %arg12[%c0_16, %c0_17] : memref<64x36xf32, #tpu.memory_space<vmem>>, vector<64x4xf32>
    tpu.vector_store %arg12[%c0_16, %c0_17], %16 {strides = array<i32>} : memref<64x36xf32, #tpu.memory_space<vmem>>, vector<64x4xf32>,
    %c0_18 = arith.constant 0 : index
    %c1_19 = arith.constant 1 : index
    %c0_20 = arith.constant 0 : index
    %18 = tpu.strided_load %arg10[%c0_18, %c1_19, %c0_20] {strides = array<i32: 2, 2, 1>} : memref<18x18x4xf32, #tpu.memory_space<vmem>>, vector<8x8x4xf32>
    %19 = vector.shape_cast %18 : vector<8x8x4xf32> to vector<64x4xf32>
    %c0_21 = arith.constant 0 : index
    %c4 = arith.constant 4 : index
    %20 = vector.load %arg12[%c0_21, %c4] : memref<64x36xf32, #tpu.memory_space<vmem>>, vector<64x4xf32>
    tpu.vector_store %arg12[%c0_21, %c4], %19 {strides = array<i32>} : memref<64x36xf32, #tpu.memory_space<vmem>>, vector<64x4xf32>,
    %c0_22 = arith.constant 0 : index
    %c2 = arith.constant 2 : index
    %c0_23 = arith.constant 0 : index
    %21 = tpu.strided_load %arg10[%c0_22, %c2, %c0_23] {strides = array<i32: 2, 2, 1>} : memref<18x18x4xf32, #tpu.memory_space<vmem>>, vector<8x8x4xf32>
    %22 = vector.shape_cast %21 : vector<8x8x4xf32> to vector<64x4xf32>
    %c0_24 = arith.constant 0 : index
    %c8 = arith.constant 8 : index
    %23 = vector.load %arg12[%c0_24, %c8] : memref<64x36xf32, #tpu.memory_space<vmem>>, vector<64x4xf32>
    tpu.vector_store %arg12[%c0_24, %c8], %22 {strides = array<i32>} : memref<64x36xf32, #tpu.memory_space<vmem>>, vector<64x4xf32>,
    %c1_25 = arith.constant 1 : index
    %c0_26 = arith.constant 0 : index
    %c0_27 = arith.constant 0 : index
    %24 = tpu.strided_load %arg10[%c1_25, %c0_26, %c0_27] {strides = array<i32: 2, 2, 1>} : memref<18x18x4xf32, #tpu.memory_space<vmem>>, vector<8x8x4xf32>
    %25 = vector.shape_cast %24 : vector<8x8x4xf32> to vector<64x4xf32>
    %c0_28 = arith.constant 0 : index
    %c12 = arith.constant 12 : index
    %26 = vector.load %arg12[%c0_28, %c12] : memref<64x36xf32, #tpu.memory_space<vmem>>, vector<64x4xf32>
    tpu.vector_store %arg12[%c0_28, %c12], %25 {strides = array<i32>} : memref<64x36xf32, #tpu.memory_space<vmem>>, vector<64x4xf32>,
    %c1_29 = arith.constant 1 : index
    %c1_30 = arith.constant 1 : index
    %c0_31 = arith.constant 0 : index
    %27 = tpu.strided_load %arg10[%c1_29, %c1_30, %c0_31] {strides = array<i32: 2, 2, 1>} : memref<18x18x4xf32, #tpu.memory_space<vmem>>, vector<8x8x4xf32>
    %28 = vector.shape_cast %27 : vector<8x8x4xf32> to vector<64x4xf32>
    %c0_32 = arith.constant 0 : index
    %c16 = arith.constant 16 : index
    %29 = vector.load %arg12[%c0_32, %c16] : memref<64x36xf32, #tpu.memory_space<vmem>>, vector<64x4xf32>
    tpu.vector_store %arg12[%c0_32, %c16], %28 {strides = array<i32>} : memref<64x36xf32, #tpu.memory_space<vmem>>, vector<64x4xf32>,
    %c1_33 = arith.constant 1 : index
    %c2_34 = arith.constant 2 : index
    %c0_35 = arith.constant 0 : index
    %30 = tpu.strided_load %arg10[%c1_33, %c2_34, %c0_35] {strides = array<i32: 2, 2, 1>} : memref<18x18x4xf32, #tpu.memory_space<vmem>>, vector<8x8x4xf32>
    %31 = vector.shape_cast %30 : vector<8x8x4xf32> to vector<64x4xf32>
    %c0_36 = arith.constant 0 : index
    %c20 = arith.constant 20 : index
    %32 = vector.load %arg12[%c0_36, %c20] : memref<64x36xf32, #tpu.memory_space<vmem>>, vector<64x4xf32>
    tpu.vector_store %arg12[%c0_36, %c20], %31 {strides = array<i32>} : memref<64x36xf32, #tpu.memory_space<vmem>>, vector<64x4xf32>,
    %c2_37 = arith.constant 2 : index
    %c0_38 = arith.constant 0 : index
    %c0_39 = arith.constant 0 : index
    %33 = tpu.strided_load %arg10[%c2_37, %c0_38, %c0_39] {strides = array<i32: 2, 2, 1>} : memref<18x18x4xf32, #tpu.memory_space<vmem>>, vector<8x8x4xf32>
    %34 = vector.shape_cast %33 : vector<8x8x4xf32> to vector<64x4xf32>
    %c0_40 = arith.constant 0 : index
    %c24 = arith.constant 24 : index
    %35 = vector.load %arg12[%c0_40, %c24] : memref<64x36xf32, #tpu.memory_space<vmem>>, vector<64x4xf32>
    tpu.vector_store %arg12[%c0_40, %c24], %34 {strides = array<i32>} : memref<64x36xf32, #tpu.memory_space<vmem>>, vector<64x4xf32>,
    %c2_41 = arith.constant 2 : index
    %c1_42 = arith.constant 1 : index
    %c0_43 = arith.constant 0 : index
    %36 = tpu.strided_load %arg10[%c2_41, %c1_42, %c0_43] {strides = array<i32: 2, 2, 1>} : memref<18x18x4xf32, #tpu.memory_space<vmem>>, vector<8x8x4xf32>
    %37 = vector.shape_cast %36 : vector<8x8x4xf32> to vector<64x4xf32>
    %c0_44 = arith.constant 0 : index
    %c28 = arith.constant 28 : index
    %38 = vector.load %arg12[%c0_44, %c28] : memref<64x36xf32, #tpu.memory_space<vmem>>, vector<64x4xf32>
    tpu.vector_store %arg12[%c0_44, %c28], %37 {strides = array<i32>} : memref<64x36xf32, #tpu.memory_space<vmem>>, vector<64x4xf32>,
    %c2_45 = arith.constant 2 : index
    %c2_46 = arith.constant 2 : index
    %c0_47 = arith.constant 0 : index
    %39 = tpu.strided_load %arg10[%c2_45, %c2_46, %c0_47] {strides = array<i32: 2, 2, 1>} : memref<18x18x4xf32, #tpu.memory_space<vmem>>, vector<8x8x4xf32>
    %40 = vector.shape_cast %39 : vector<8x8x4xf32> to vector<64x4xf32>
    %c0_48 = arith.constant 0 : index
    %c32 = arith.constant 32 : index
    %41 = vector.load %arg12[%c0_48, %c32] : memref<64x36xf32, #tpu.memory_space<vmem>>, vector<64x4xf32>
    tpu.vector_store %arg12[%c0_48, %c32], %40 {strides = array<i32>} : memref<64x36xf32, #tpu.memory_space<vmem>>, vector<64x4xf32>,
    %c0_49 = arith.constant 0 : index
    %c0_50 = arith.constant 0 : index
    %42 = vector.load %arg12[%c0_49, %c0_50] : memref<64x36xf32, #tpu.memory_space<vmem>>, vector<64x36xf32>
    %c0_51 = arith.constant 0 : index
    %c0_52 = arith.constant 0 : index
    %43 = vector.load %arg4[%c0_51, %c0_52] : memref<36x8xf32, #tpu.memory_space<vmem>>, vector<36x8xf32>
    %cst_53 = arith.constant dense<0.000000e+00> : vector<64x8xf32>
    %44 = tpu.matmul %42, %43, %cst_53 {dimension_numbers = #tpu.dot_dimension_numbers<[1], [0], [0], [1], [0, 0, 1, 1], [], []>} : vector<64x36xf32>, vector<36x8xf32>, vector<64x8xf32> -> vector<64x8xf32>
    %c0_54 = arith.constant 0 : index
    %c0_55 = arith.constant 0 : index
    %45 = vector.load %arg5[%c0_54, %c0_55] : memref<1x8xf32, #tpu.memory_space<vmem>>, vector<1x8xf32>
    %46 = vector.broadcast %45 : vector<1x8xf32> to vector<64x8xf32>
    %47 = arith.mulf %44, %46 : vector<64x8xf32>
    %c0_56 = arith.constant 0 : index
    %c0_57 = arith.constant 0 : index
    %48 = vector.load %arg6[%c0_56, %c0_57] : memref<1x8xf32, #tpu.memory_space<vmem>>, vector<1x8xf32>
    %49 = vector.broadcast %48 : vector<1x8xf32> to vector<64x8xf32>
    %50 = arith.addf %47, %49 : vector<64x8xf32>
    %cst_58 = arith.constant 0.000000e+00 : f32
    %51 = vector.broadcast %cst_58 : f32 to vector<64x8xf32>
    %52 = arith.maximumf %50, %51 : vector<64x8xf32>
    %cst_59 = arith.constant 0.000000e+00 : f32
    %53 = vector.broadcast %cst_59 : f32 to vector<10x10x8xf32>
    %c0_60 = arith.constant 0 : index
    %c0_61 = arith.constant 0 : index
    %c0_62 = arith.constant 0 : index
    %54 = vector.load %arg11[%c0_60, %c0_61, %c0_62] : memref<10x10x8xf32, #tpu.memory_space<vmem>>, vector<10x10x8xf32>
    tpu.vector_store %arg11[%c0_60, %c0_61, %c0_62], %53 {strides = array<i32>} : memref<10x10x8xf32, #tpu.memory_space<vmem>>, vector<10x10x8xf32>,
    %55 = vector.shape_cast %52 : vector<64x8xf32> to vector<8x8x8xf32>
    %c1_63 = arith.constant 1 : index
    %c1_64 = arith.constant 1 : index
    %c0_65 = arith.constant 0 : index
    %56 = vector.load %arg11[%c1_63, %c1_64, %c0_65] : memref<10x10x8xf32, #tpu.memory_space<vmem>>, vector<8x8x8xf32>
    tpu.vector_store %arg11[%c1_63, %c1_64, %c0_65], %55 {strides = array<i32>} : memref<10x10x8xf32, #tpu.memory_space<vmem>>, vector<8x8x8xf32>,
    %c0_66 = arith.constant 0 : index
    %c0_67 = arith.constant 0 : index
    %c0_68 = arith.constant 0 : index
    %57 = vector.load %arg11[%c0_66, %c0_67, %c0_68] : memref<10x10x8xf32, #tpu.memory_space<vmem>>, vector<8x8x8xf32>
    %58 = vector.shape_cast %57 : vector<8x8x8xf32> to vector<64x8xf32>
    %c0_69 = arith.constant 0 : index
    %c0_70 = arith.constant 0 : index
    %59 = vector.load %arg13[%c0_69, %c0_70] : memref<64x72xf32, #tpu.memory_space<vmem>>, vector<64x8xf32>
    tpu.vector_store %arg13[%c0_69, %c0_70], %58 {strides = array<i32>} : memref<64x72xf32, #tpu.memory_space<vmem>>, vector<64x8xf32>,
    %c0_71 = arith.constant 0 : index
    %c1_72 = arith.constant 1 : index
    %c0_73 = arith.constant 0 : index
    %60 = vector.load %arg11[%c0_71, %c1_72, %c0_73] : memref<10x10x8xf32, #tpu.memory_space<vmem>>, vector<8x8x8xf32>
    %61 = vector.shape_cast %60 : vector<8x8x8xf32> to vector<64x8xf32>
    %c0_74 = arith.constant 0 : index
    %c8_75 = arith.constant 8 : index
    %62 = vector.load %arg13[%c0_74, %c8_75] : memref<64x72xf32, #tpu.memory_space<vmem>>, vector<64x8xf32>
    tpu.vector_store %arg13[%c0_74, %c8_75], %61 {strides = array<i32>} : memref<64x72xf32, #tpu.memory_space<vmem>>, vector<64x8xf32>,
    %c0_76 = arith.constant 0 : index
    %c2_77 = arith.constant 2 : index
    %c0_78 = arith.constant 0 : index
    %63 = vector.load %arg11[%c0_76, %c2_77, %c0_78] : memref<10x10x8xf32, #tpu.memory_space<vmem>>, vector<8x8x8xf32>
    %64 = vector.shape_cast %63 : vector<8x8x8xf32> to vector<64x8xf32>
    %c0_79 = arith.constant 0 : index
    %c16_80 = arith.constant 16 : index
    %65 = vector.load %arg13[%c0_79, %c16_80] : memref<64x72xf32, #tpu.memory_space<vmem>>, vector<64x8xf32>
    tpu.vector_store %arg13[%c0_79, %c16_80], %64 {strides = array<i32>} : memref<64x72xf32, #tpu.memory_space<vmem>>, vector<64x8xf32>,
    %c1_81 = arith.constant 1 : index
    %c0_82 = arith.constant 0 : index
    %c0_83 = arith.constant 0 : index
    %66 = vector.load %arg11[%c1_81, %c0_82, %c0_83] : memref<10x10x8xf32, #tpu.memory_space<vmem>>, vector<8x8x8xf32>
    %67 = vector.shape_cast %66 : vector<8x8x8xf32> to vector<64x8xf32>
    %c0_84 = arith.constant 0 : index
    %c24_85 = arith.constant 24 : index
    %68 = vector.load %arg13[%c0_84, %c24_85] : memref<64x72xf32, #tpu.memory_space<vmem>>, vector<64x8xf32>
    tpu.vector_store %arg13[%c0_84, %c24_85], %67 {strides = array<i32>} : memref<64x72xf32, #tpu.memory_space<vmem>>, vector<64x8xf32>,
    %c1_86 = arith.constant 1 : index
    %c1_87 = arith.constant 1 : index
    %c0_88 = arith.constant 0 : index
    %69 = vector.load %arg11[%c1_86, %c1_87, %c0_88] : memref<10x10x8xf32, #tpu.memory_space<vmem>>, vector<8x8x8xf32>
    %70 = vector.shape_cast %69 : vector<8x8x8xf32> to vector<64x8xf32>
    %c0_89 = arith.constant 0 : index
    %c32_90 = arith.constant 32 : index
    %71 = vector.load %arg13[%c0_89, %c32_90] : memref<64x72xf32, #tpu.memory_space<vmem>>, vector<64x8xf32>
    tpu.vector_store %arg13[%c0_89, %c32_90], %70 {strides = array<i32>} : memref<64x72xf32, #tpu.memory_space<vmem>>, vector<64x8xf32>,
    %c1_91 = arith.constant 1 : index
    %c2_92 = arith.constant 2 : index
    %c0_93 = arith.constant 0 : index
    %72 = vector.load %arg11[%c1_91, %c2_92, %c0_93] : memref<10x10x8xf32, #tpu.memory_space<vmem>>, vector<8x8x8xf32>
    %73 = vector.shape_cast %72 : vector<8x8x8xf32> to vector<64x8xf32>
    %c0_94 = arith.constant 0 : index
    %c40 = arith.constant 40 : index
    %74 = vector.load %arg13[%c0_94, %c40] : memref<64x72xf32, #tpu.memory_space<vmem>>, vector<64x8xf32>
    tpu.vector_store %arg13[%c0_94, %c40], %73 {strides = array<i32>} : memref<64x72xf32, #tpu.memory_space<vmem>>, vector<64x8xf32>,
    %c2_95 = arith.constant 2 : index
    %c0_96 = arith.constant 0 : index
    %c0_97 = arith.constant 0 : index
    %75 = vector.load %arg11[%c2_95, %c0_96, %c0_97] : memref<10x10x8xf32, #tpu.memory_space<vmem>>, vector<8x8x8xf32>
    %76 = vector.shape_cast %75 : vector<8x8x8xf32> to vector<64x8xf32>
    %c0_98 = arith.constant 0 : index
    %c48 = arith.constant 48 : index
    %77 = vector.load %arg13[%c0_98, %c48] : memref<64x72xf32, #tpu.memory_space<vmem>>, vector<64x8xf32>
    tpu.vector_store %arg13[%c0_98, %c48], %76 {strides = array<i32>} : memref<64x72xf32, #tpu.memory_space<vmem>>, vector<64x8xf32>,
    %c2_99 = arith.constant 2 : index
    %c1_100 = arith.constant 1 : index
    %c0_101 = arith.constant 0 : index
    %78 = vector.load %arg11[%c2_99, %c1_100, %c0_101] : memref<10x10x8xf32, #tpu.memory_space<vmem>>, vector<8x8x8xf32>
    %79 = vector.shape_cast %78 : vector<8x8x8xf32> to vector<64x8xf32>
    %c0_102 = arith.constant 0 : index
    %c56 = arith.constant 56 : index
    %80 = vector.load %arg13[%c0_102, %c56] : memref<64x72xf32, #tpu.memory_space<vmem>>, vector<64x8xf32>
    tpu.vector_store %arg13[%c0_102, %c56], %79 {strides = array<i32>} : memref<64x72xf32, #tpu.memory_space<vmem>>, vector<64x8xf32>,
    %c2_103 = arith.constant 2 : index
    %c2_104 = arith.constant 2 : index
    %c0_105 = arith.constant 0 : index
    %81 = vector.load %arg11[%c2_103, %c2_104, %c0_105] : memref<10x10x8xf32, #tpu.memory_space<vmem>>, vector<8x8x8xf32>
    %82 = vector.shape_cast %81 : vector<8x8x8xf32> to vector<64x8xf32>
    %c0_106 = arith.constant 0 : index
    %c64 = arith.constant 64 : index
    %83 = vector.load %arg13[%c0_106, %c64] : memref<64x72xf32, #tpu.memory_space<vmem>>, vector<64x8xf32>
    tpu.vector_store %arg13[%c0_106, %c64], %82 {strides = array<i32>} : memref<64x72xf32, #tpu.memory_space<vmem>>, vector<64x8xf32>,
    %c0_107 = arith.constant 0 : index
    %c0_108 = arith.constant 0 : index
    %84 = vector.load %arg13[%c0_107, %c0_108] : memref<64x72xf32, #tpu.memory_space<vmem>>, vector<64x72xf32>
    %c0_109 = arith.constant 0 : index
    %c0_110 = arith.constant 0 : index
    %85 = vector.load %arg7[%c0_109, %c0_110] : memref<72x8xf32, #tpu.memory_space<vmem>>, vector<72x8xf32>
    %cst_111 = arith.constant dense<0.000000e+00> : vector<64x8xf32>
    %86 = tpu.matmul %84, %85, %cst_111 {dimension_numbers = #tpu.dot_dimension_numbers<[1], [0], [0], [1], [0, 0, 1, 1], [], []>} : vector<64x72xf32>, vector<72x8xf32>, vector<64x8xf32> -> vector<64x8xf32>
    %c1_112 = arith.constant 1 : index
    %c1_113 = arith.constant 1 : index
    %c0_114 = arith.constant 0 : index
    %87 = tpu.strided_load %arg10[%c1_112, %c1_113, %c0_114] {strides = array<i32: 2, 2, 1>} : memref<18x18x4xf32, #tpu.memory_space<vmem>>, vector<8x8x4xf32>
    %88 = vector.shape_cast %87 : vector<8x8x4xf32> to vector<64x4xf32>
    %c0_115 = arith.constant 0 : index
    %c0_116 = arith.constant 0 : index
    %89 = vector.load %arg8[%c0_115, %c0_116] : memref<4x8xf32, #tpu.memory_space<vmem>>, vector<4x8xf32>
    %cst_117 = arith.constant dense<0.000000e+00> : vector<64x8xf32>
    %90 = tpu.matmul %88, %89, %cst_117 {dimension_numbers = #tpu.dot_dimension_numbers<[1], [0], [0], [1], [0, 0, 1, 1], [], []>} : vector<64x4xf32>, vector<4x8xf32>, vector<64x8xf32> -> vector<64x8xf32>
    %91 = arith.addf %86, %90 : vector<64x8xf32>
    %92 = vector.shape_cast %91 : vector<64x8xf32> to vector<8x8x8xf32>
    %c0_118 = arith.constant 0 : index
    %c0_119 = arith.constant 0 : index
    %c0_120 = arith.constant 0 : index
    %c0_121 = arith.constant 0 : index
    %93 = vector.load %arg9[%c0_118, %c0_119, %c0_120, %c0_121] : memref<1x8x8x8xf32, #tpu.memory_space<vmem>>, vector<1x8x8x8xf32>
    %94 = vector.shape_cast %93 : vector<1x8x8x8xf32> to vector<8x8x8xf32>
    %95 = vector.shape_cast %92 : vector<8x8x8xf32> to vector<1x8x8x8xf32>
    tpu.vector_store %arg9[%c0_118, %c0_119, %c0_120, %c0_121], %95 {strides = array<i32>} : memref<1x8x8x8xf32, #tpu.memory_space<vmem>>, vector<1x8x8x8xf32>,
    return
  }
  func.func @transform_0(%arg0: i32) -> (i32, i32, i32, i32) {
    %c0_i32 = arith.constant 0 : i32
    %c0_i32_0 = arith.constant 0 : i32
    %c0_i32_1 = arith.constant 0 : i32
    %c0_i32_2 = arith.constant 0 : i32
    return %arg0, %c0_i32, %c0_i32_0, %c0_i32_1 : i32, i32, i32, i32
  }
  func.func @transform_1(%arg0: i32) -> (i32, i32) {
    %c0_i32 = arith.constant 0 : i32
    %c0_i32_0 = arith.constant 0 : i32
    %c0_i32_1 = arith.constant 0 : i32
    return %c0_i32, %c0_i32_0 : i32, i32
  }
  func.func @transform_2(%arg0: i32) -> (i32, i32) {
    %c0_i32 = arith.constant 0 : i32
    %c0_i32_0 = arith.constant 0 : i32
    %c0_i32_1 = arith.constant 0 : i32
    return %c0_i32, %c0_i32_0 : i32, i32
  }
  func.func @transform_3(%arg0: i32) -> (i32, i32) {
    %c0_i32 = arith.constant 0 : i32
    %c0_i32_0 = arith.constant 0 : i32
    %c0_i32_1 = arith.constant 0 : i32
    return %c0_i32, %c0_i32_0 : i32, i32
  }
  func.func @transform_4(%arg0: i32) -> (i32, i32) {
    %c0_i32 = arith.constant 0 : i32
    %c0_i32_0 = arith.constant 0 : i32
    %c0_i32_1 = arith.constant 0 : i32
    return %c0_i32, %c0_i32_0 : i32, i32
  }
  func.func @transform_5(%arg0: i32) -> (i32, i32) {
    %c0_i32 = arith.constant 0 : i32
    %c0_i32_0 = arith.constant 0 : i32
    %c0_i32_1 = arith.constant 0 : i32
    return %c0_i32, %c0_i32_0 : i32, i32
  }
  func.func @transform_6(%arg0: i32) -> (i32, i32) {
    %c0_i32 = arith.constant 0 : i32
    %c0_i32_0 = arith.constant 0 : i32
    %c0_i32_1 = arith.constant 0 : i32
    return %c0_i32, %c0_i32_0 : i32, i32
  }
  func.func @transform_7(%arg0: i32) -> (i32, i32) {
    %c0_i32 = arith.constant 0 : i32
    %c0_i32_0 = arith.constant 0 : i32
    %c0_i32_1 = arith.constant 0 : i32
    return %c0_i32, %c0_i32_0 : i32, i32
  }
  func.func @transform_8(%arg0: i32) -> (i32, i32, i32, i32) {
    %c0_i32 = arith.constant 0 : i32
    %c0_i32_0 = arith.constant 0 : i32
    %c0_i32_1 = arith.constant 0 : i32
    %c0_i32_2 = arith.constant 0 : i32
    return %arg0, %c0_i32, %c0_i32_0, %c0_i32_1 : i32, i32, i32, i32
  }
}

</mosaic_0001>

<bundles_post_ra>
// kernel: tpu_custom_call.1
= control target key start
LH: loop header
LB: loop body
LE: loop exit
PB: predicated region body
PF: predicated region fallthrough
CT: control target
= control target key end

     0   :  { %13 = vsyncpa [#allocation7], 0  ;;  %s2860_s0 = inlined_call_operand.vmem [shape: f32[2,16,16,4], index: 0, kind: input, shape index: {}]   ;;  %s2861_s1 = inlined_call_operand.vmem [shape: f32[1,4], index: 1, kind: input, shape index: {}]   ;;  %s2862_s2 = inlined_call_operand.vmem [shape: f32[1,4], index: 2, kind: input, shape index: {}]   ;;  %s2863_s3 = inlined_call_operand.vmem [shape: f32[36,8], index: 3, kind: input, shape index: {}]   ;;  %s2864_s4 = inlined_call_operand.vmem [shape: f32[1,8], index: 4, kind: input, shape index: {}]   ;;  %s2865_s5 = inlined_call_operand.vmem [shape: f32[1,8], index: 5, kind: input, shape index: {}]   ;;  %s2866_s6 = inlined_call_operand.vmem [shape: f32[72,8], index: 6, kind: input, shape index: {}]   ;;  %s2867_s7 = inlined_call_operand.vmem [shape: f32[4,8], index: 7, kind: input, shape index: {}]   ;;  %s2868_s8 = inlined_call_operand.hbm [shape: f32[2,8,8,8], index: 8, kind: output, shape index: {}]  }
   0x1   :  { %15 = vsyncpa [#allocation7 + $0x1], 0  ;;  %s2083_s27 = smov 0   ;;  %s2085_s28 = smov 0  }
   0x2   :  { %s2087_s29 = smov 0   ;;  %s2089_s30 = smov 0  }
   0x3 LB: > { %s2104_s9 = sadd.s32 4294967295, %s2022_s30   ;;  %s1854_s10 = sadd.s32 4294967294, %s2022_s30   ;;  %s2022_s30 = sphi %s2089_s30, %s2883_s30   ;;  %s2018_s29 = sphi %s2087_s29, %s2882_s29   ;;  %s2014_s28 = sphi %s2085_s28, %s2881_s28   ;;  %s2010_s27 = sphi %s2083_s27, %s2880_s27  }
   0x4   : > { %s2108_s11 = sadd.s32 1, %s2022_s30   ;;  %s201_s12 = sadd.s32 1, %s2018_s29 }
   0x5   : > { %s198_s13 = ssub.s32 %s2022_s30, %s2108_s11  ;;  %p211_p0 = scmp.ne.s32.totalorder %s2018_s29, %s2014_s28 }
   0x6   : > { %p199_p1 = scmp.eq.s32.totalorder %s198_s13, 0  ;;  %p212_p2 = scmp.eq.s32.totalorder %s2104_s9, 1 }
   0x7   : > { %p217_p3 = scmp.ne.s32.totalorder %s2014_s28, %s2010_s27  ;;  %p218_p4 = scmp.eq.s32.totalorder %s1854_s10, 1 }
   0x8   : > { %s2119_s14 = scalar_select %p199_p1, %s2018_s29, %s201_s12  }
   0x9   : > { %p2121_p5 = por %p212_p2, %p211_p0  ;;  %p2125_p6 = por %p218_p4, %p217_p3 }
   0xa   : > { %p1857_p7 = scmp.ge.s32.totalorder %s2022_s30, 1  ;;  %p265_p8 = scmp.lt.s32.totalorder %s2022_s30, 3 }
   0xc   : > { %p266_p9 = pnand %p1857_p7, %p265_p8 }
   0xd   : > { %s2025_s17 = smov (!%p266_p9), 4   ;;  %p299_p10 = scmp.lt.s32.totalorder (!%p266_p9), %s2104_s9, 1 }
   0xe   : > { %269 = sbr.rel (%p266_p9) target bundleno = 791 (0x317), region = 52  ;;  %s2026_s10 = smov (!%p266_p9), 8  }
   0xf   : > { %s2869_s12 = smov (!%p266_p9), 12   ;;  %s2028_s13 = smov (!%p266_p9), 20  }
  0x10   : > { %s2031_s20 = smov (!%p266_p9), 24   ;;  %s2871_s21 = smov (!%p266_p9), 32  }
  0x11   : > { %s2033_s23 = smov (!%p266_p9), 48   ;;  %s2034_s24 = smov (!%p266_p9), 40  }
  0x12   : > { %s2035_s25 = smov (!%p266_p9), 64   ;;  %s2873_s26 = smov (!%p266_p9), 56  }
  0x13   : > { %vm440_vm0 = vcmask 31744   ;;  %v2024_v0 = vmov 0.0   ;;  %s300_s18 = scalar_select %p299_p10, %s2104_s9, 1  ;;  %vm443_vm1 = vcmask 25600   ;;  %v2214_v2 = vld [vmem:[%s2861_s1] ss:$0 sm:$0xff] }
  0x14   : > { %441 = vst.msk [vmem:[#allocation2] sm:$0xff] %vm440_vm0, %v2024_v0  ;;  %v2231_v7 = vld [vmem:[%s2862_s2] ss:$0 sm:$0xff]  ;;  %vm600_vm2 = vcmask 64544   ;;  %vm657_vm3 = vcmask 97344   ;;  %vm1045_vm4 = vcmask 1043456  }
  0x15   : > { %442 = vst.msk [vmem:[#allocation2 + $0x8] sm:$0xff] %vm440_vm0, %v2024_v0  ;;  %s1892_s19 = sshll.u32 %s300_s18, 8  ;;  %s2029_s18 = smov 28   ;;  %vm713_vm5 = vcmask 130144   ;;  %vm770_vm6 = vcmask 162944   ;;  %vm827_vm7 = vcmask 195744  }
  0x16   : > { %445 = vst.msk [vmem:[#allocation2 + $0x18] sm:$0xff] %vm440_vm0, %v2024_v0  ;;  %s2207_s22 = scalar_lea.vmem %s2860_s0, %s1892_s19  ;;  %s2030_s19 = smov 16   ;;  %vm884_vm8 = vcmask 228544   ;;  %vm941_vm9 = vcmask 261344   ;;  %vm998_vm10 = vcmask 294144   ;;  %vm1020_vm11 = vcmask 293888  }
  0x17   : > { %446 = vst.msk [vmem:[#allocation2 + $0x20] sm:$0xff] %vm440_vm0, %v2024_v0  ;;  %v304_v3 = vld [vmem:[%s2207_s22] sm:$0xff]  ;;  %v305_v4 = vld [vmem:[%s2207_s22 + $0x8] sm:$0xff]  ;;  %v306_v5 = vld [vmem:[%s2207_s22 + $0x10] sm:$0xff]  ;;  %vm1122_vm12 = vcmask 64512   ;;  %vm1124_vm13 = vcmask 58368  }
  0x18   : > { %448 = vst.msk [vmem:[#allocation2 + $0x30] sm:$0xff] %vm440_vm0, %v2024_v0  ;;  %v340_v6 = vmul.f32 %v2214_v2, %v304_v3  ;;  %v307_v8 = vld [vmem:[%s2207_s22 + $0x18] sm:$0xff]  ;;  %v341_v10 = vmul.f32 %v2214_v2, %v305_v4  ;;  %v308_v11 = vld [vmem:[%s2207_s22 + $0x20] sm:$0xff]  ;;  %v342_v12 = vmul.f32 %v2214_v2, %v306_v5  ;;  %v309_v13 = vld [vmem:[%s2207_s22 + $0x28] sm:$0xff]  ;;  %vm1209_vm14 = vcmask 130112  }
  0x19   : > { %449 = vst.msk [vmem:[#allocation2 + $0x38] sm:$0xff] %vm440_vm0, %v2024_v0  ;;  %v343_v14 = vmul.f32 %v2214_v2, %v307_v8  ;;  %v344_v16 = vmul.f32 %v2214_v2, %v308_v11  ;;  %v345_v18 = vmul.f32 %v2214_v2, %v309_v13  ;;  %v310_v20 = vld [vmem:[%s2207_s22 + $0x30] sm:$0xff]  ;;  %v311_v21 = vld [vmem:[%s2207_s22 + $0x38] sm:$0xff]  ;;  %v312_v37 = vld [vmem:[%s2207_s22 + $0x40] sm:$0xff]  ;;  %vm1258_vm15 = vcmask 195712  }
  0x1a   : > { %451 = vst.msk [vmem:[#allocation2 + $0x48] sm:$0xff] %vm440_vm0, %v2024_v0  ;;  %v376_v15 = vadd.f32 %v2231_v7, %v340_v6  ;;  %v377_v17 = vadd.f32 %v2231_v7, %v341_v10  ;;  %v378_v19 = vadd.f32 %v2231_v7, %v342_v12  ;;  %v346_v23 = vmul.f32 %v2214_v2, %v310_v20  ;;  %v313_v38 = vld [vmem:[%s2207_s22 + $0x48] sm:$0xff]  ;;  %v314_v48 = vld [vmem:[%s2207_s22 + $0x50] sm:$0xff]  ;;  %v315_v49 = vld [vmem:[%s2207_s22 + $0x58] sm:$0xff] }
  0x1b   : > { %452 = vst.msk [vmem:[#allocation2 + $0x50] sm:$0xff] %vm440_vm0, %v2024_v0  ;;  %v379_v22 = vadd.f32 %v2231_v7, %v343_v14  ;;  %v347_v24 = vmul.f32 %v2214_v2, %v311_v21  ;;  %v380_v26 = vadd.f32 %v2231_v7, %v344_v16  ;;  %v381_v28 = vadd.f32 %v2231_v7, %v345_v18  ;;  %v316_v62 = vld [vmem:[%s2207_s22 + $0x60] sm:$0xff]  ;;  %v317_v63 = vld [vmem:[%s2207_s22 + $0x68] sm:$0xff]  ;;  %v318_v12 = vld [vmem:[%s2207_s22 + $0x70] sm:$0xff] }
  0x1c   : > { %v553_v1 = vld [vmem:[#allocation2 + $0x1] ss:$2 sm:$0xff]  ;;  %454 = vst.msk [vmem:[#allocation2 + $0x60] sm:$0xff] %vm440_vm0, %v2024_v0  ;;  %v408_v25 = vmax.f32 %v376_v15, 0.0  ;;  %v409_v27 = vmax.f32 %v377_v17, 0.0  ;;  %v410_v29 = vmax.f32 %v378_v19, 0.0  ;;  %v382_v30 = vadd.f32 %v2231_v7, %v346_v23 }
  0x1d   : > { %576 = vrot.lane.b32.xlu0 %v553_v1, %s2025_s17  ;;  %455 = vst.msk [vmem:[#allocation2 + $0x68] sm:$0xff] %vm440_vm0, %v2024_v0  ;;  %v411_v31 = vmax.f32 %v379_v22, 0.0  ;;  %v383_v32 = vadd.f32 %v2231_v7, %v347_v24  ;;  %v412_v33 = vmax.f32 %v380_v26, 0.0  ;;  %v413_v34 = vmax.f32 %v381_v28, 0.0  ;;  %v319_v13 = vld [vmem:[%s2207_s22 + $0x78] sm:$0xff]  ;;  %v320_v26 = vld [vmem:[%s2207_s22 + $0x80] sm:$0xff] }
  0x1e   : > { %457 = vst.msk [vmem:[#allocation2 + $0x78] sm:$0xff] %vm440_vm0, %v2024_v0  ;;  %v414_v35 = vmax.f32 %v382_v30, 0.0  ;;  %v348_v39 = vmul.f32 %v2214_v2, %v312_v37  ;;  %v349_v40 = vmul.f32 %v2214_v2, %v313_v38  ;;  %v350_v50 = vmul.f32 %v2214_v2, %v314_v48  ;;  %v322_v37 = vld [vmem:[%s2207_s22 + $0x90] sm:$0xff]  ;;  %v323_v38 = vld [vmem:[%s2207_s22 + $0x98] sm:$0xff]  ;;  %v324_v48 = vld [vmem:[%s2207_s22 + $0xa0] sm:$0xff] }
  0x1f   : > { %458 = vst.msk [vmem:[#allocation2 + $0x80] sm:$0xff] %vm440_vm0, %v2024_v0  ;;  %v415_v36 = vmax.f32 %v383_v32, 0.0  ;;  %v351_v53 = vmul.f32 %v2214_v2, %v315_v49  ;;  %v352_v1 = vmul.f32 %v2214_v2, %v316_v62  ;;  %v353_v3 = vmul.f32 %v2214_v2, %v317_v63  ;;  %v325_v49 = vld [vmem:[%s2207_s22 + $0xa8] sm:$0xff] }
  0x20   : > { %460 = vst.msk [vmem:[#allocation2 + $0x90] sm:$0xff] %vm440_vm0, %v2024_v0  ;;  %v384_v41 = vadd.f32 %v2231_v7, %v348_v39  ;;  %v385_v42 = vadd.f32 %v2231_v7, %v349_v40  ;;  %v386_v54 = vadd.f32 %v2231_v7, %v350_v50  ;;  %v354_v14 = vmul.f32 %v2214_v2, %v318_v12 }
  0x21   : > { %461 = vst.msk [vmem:[#allocation2 + $0x98] sm:$0xff] %vm440_vm0, %v2024_v0  ;;  %v387_v56 = vadd.f32 %v2231_v7, %v351_v53  ;;  %v388_v6 = vadd.f32 %v2231_v7, %v352_v1  ;;  %v389_v8 = vadd.f32 %v2231_v7, %v353_v3  ;;  %v355_v15 = vmul.f32 %v2214_v2, %v319_v13 }
  0x22   : > { %463 = vst.msk [vmem:[#allocation2 + $0xa8] sm:$0xff] %vm440_vm0, %v2024_v0  ;;  %v416_v45 = vmax.f32 %v384_v41, 0.0  ;;  %v417_v46 = vmax.f32 %v385_v42, 0.0  ;;  %v418_v57 = vmax.f32 %v386_v54, 0.0  ;;  %v390_v18 = vadd.f32 %v2231_v7, %v354_v14  ;;  %v328_v14 = vld [vmem:[%s2207_s22 + $0xc0] sm:$0xff] }
  0x23   : > { %464 = vst.msk [vmem:[#allocation2 + $0xb0] sm:$0xff] %vm440_vm0, %v2024_v0  ;;  %v419_v58 = vmax.f32 %v387_v56, 0.0  ;;  %v420_v10 = vmax.f32 %v388_v6, 0.0  ;;  %v421_v11 = vmax.f32 %v389_v8, 0.0  ;;  %v391_v19 = vadd.f32 %v2231_v7, %v355_v15  ;;  %v529_v6 = vld [vmem:[#allocation2] ss:$2 sm:$0xff] }
  0x24   : > { %466 = vst.msk [vmem:[#allocation2 + $0xc0] sm:$0xff] %vm440_vm0, %v2024_v0  ;;  %v422_v21 = vmax.f32 %v390_v18, 0.0  ;;  %v356_v28 = vmul.f32 %v2214_v2, %v320_v26  ;;  %v358_v39 = vmul.f32 %v2214_v2, %v322_v37  ;;  %v359_v40 = vmul.f32 %v2214_v2, %v323_v38  ;;  %v329_v15 = vld [vmem:[%s2207_s22 + $0xc8] sm:$0xff]  ;;  %v330_v26 = vld [vmem:[%s2207_s22 + $0xd0] sm:$0xff] }
  0x25   : > { %467 = vst.msk [vmem:[#allocation2 + $0xc8] sm:$0xff] %vm440_vm0, %v2024_v0  ;;  %v423_v22 = vmax.f32 %v391_v19, 0.0  ;;  %v360_v50 = vmul.f32 %v2214_v2, %v324_v48  ;;  %v365_v19 = vmul.f32 %v2214_v2, %v329_v15  ;;  %v332_v48 = vld [vmem:[%s2207_s22 + $0xe0] sm:$0xff] }
  0x26   : > { %469 = vst.msk [vmem:[#allocation2 + $0xd8] sm:$0xff] %vm440_vm0, %v2024_v0  ;;  %v392_v30 = vadd.f32 %v2231_v7, %v356_v28  ;;  %v394_v41 = vadd.f32 %v2231_v7, %v358_v39  ;;  %v395_v42 = vadd.f32 %v2231_v7, %v359_v40  ;;  %v366_v28 = vmul.f32 %v2214_v2, %v330_v26 }
  0x27   : > { %470 = vst.msk [vmem:[#allocation2 + $0xe0] sm:$0xff] %vm440_vm0, %v2024_v0  ;;  %v396_v54 = vadd.f32 %v2231_v7, %v360_v50 }
  0x28   : > { %472 = vst.msk [vmem:[#allocation2 + $0xf0] sm:$0xff] %vm440_vm0, %v2024_v0 }
  0x29   : > { %473 = vst.msk [vmem:[#allocation2 + $0xf8] sm:$0xff] %vm440_vm0, %v2024_v0 }
  0x2a   : > { %475 = vst.msk [vmem:[#allocation2 + $0x108] sm:$0xff] %vm440_vm0, %v2024_v0 }
  0x2b   : > { %476 = vst.msk [vmem:[#allocation2 + $0x110] sm:$0xff] %vm440_vm0, %v2024_v0 }
  0x2c   : > { %478 = vst.msk [vmem:[#allocation2 + $0x120] sm:$0xff] %vm440_vm0, %v2024_v0 }
  0x2d   : > { %479 = vst.msk [vmem:[#allocation2 + $0x128] sm:$0xff] %vm440_vm0, %v2024_v0 }
  0x2e   : > { %481 = vst.msk [vmem:[#allocation2 + $0x138] sm:$0xff] %vm440_vm0, %v2024_v0 }
  0x2f   : > { %482 = vst.msk [vmem:[#allocation2 + $0x140] sm:$0xff] %vm440_vm0, %v2024_v0 }
  0x30   : > { %484 = vst.msk [vmem:[#allocation2 + $0x150] sm:$0xff] %vm440_vm0, %v2024_v0 }
  0x31   : > { %485 = vst.msk [vmem:[#allocation2 + $0x158] sm:$0xff] %vm440_vm0, %v2024_v0 }
  0x32   : > { %487 = vst.msk [vmem:[#allocation2 + $0x168] sm:$0xff] %vm440_vm0, %v2024_v0 }
  0x33   : > { %488 = vst.msk [vmem:[#allocation2 + $0x170] sm:$0xff] %vm440_vm0, %v2024_v0 }
  0x34   : > { %490 = vst.msk [vmem:[#allocation2 + $0x180] sm:$0xff] %vm440_vm0, %v2024_v0 }
  0x35   : > { %491 = vst.msk [vmem:[#allocation2 + $0x188] sm:$0xff] %vm440_vm0, %v2024_v0 }
  0x36   : > { %444 = vst.msk [vmem:[#allocation2 + $0x10] sm:$0x3] %vm443_vm1, %v2024_v0 }
  0x37   : > { %447 = vst.msk [vmem:[#allocation2 + $0x28] sm:$0x3] %vm443_vm1, %v2024_v0 }
  0x38   : > { %450 = vst.msk [vmem:[#allocation2 + $0x40] sm:$0x3] %vm443_vm1, %v2024_v0 }
  0x39   : > { %453 = vst.msk [vmem:[#allocation2 + $0x58] sm:$0x3] %vm443_vm1, %v2024_v0 }
  0x3a   : > { %456 = vst.msk [vmem:[#allocation2 + $0x70] sm:$0x3] %vm443_vm1, %v2024_v0 }
  0x3b   : > { %459 = vst.msk [vmem:[#allocation2 + $0x88] sm:$0x3] %vm443_vm1, %v2024_v0 }
  0x3c   : > { %462 = vst.msk [vmem:[#allocation2 + $0xa0] sm:$0x3] %vm443_vm1, %v2024_v0 }
  0x3d   : > { %v610_v9 = vld [vmem:[#allocation2 + $0x2] ss:$2 sm:$0xff]  ;;  %465 = vst.msk [vmem:[#allocation2 + $0xb8] sm:$0x3] %vm443_vm1, %v2024_v0 }
  0x3e   : > { %633 = vrot.lane.b32.xlu0 %v610_v9, %s2026_s10  ;;  %468 = vst.msk [vmem:[#allocation2 + $0xd0] sm:$0x3] %vm443_vm1, %v2024_v0 }
  0x3f   : > { %471 = vst.msk [vmem:[#allocation2 + $0xe8] sm:$0x3] %vm443_vm1, %v2024_v0 }
  0x40   : > { %474 = vst.msk [vmem:[#allocation2 + $0x100] sm:$0x3] %vm443_vm1, %v2024_v0 }
  0x41   : > { %477 = vst.msk [vmem:[#allocation2 + $0x118] sm:$0x3] %vm443_vm1, %v2024_v0 }
  0x42   : > { %480 = vst.msk [vmem:[#allocation2 + $0x130] sm:$0x3] %vm443_vm1, %v2024_v0 }
  0x43   : > { %483 = vst.msk [vmem:[#allocation2 + $0x148] sm:$0x3] %vm443_vm1, %v2024_v0 }
  0x44   : > { %486 = vst.msk [vmem:[#allocation2 + $0x160] sm:$0x3] %vm443_vm1, %v2024_v0 }
  0x45   : > { %489 = vst.msk [vmem:[#allocation2 + $0x178] sm:$0x3] %vm443_vm1, %v2024_v0 }
  0x46   : > { %492 = vst.msk [vmem:[#allocation2 + $0x190] sm:$0x3] %vm443_vm1, %v2024_v0  ;;  %vm1307_vm1 = vcmask 261312  }
  0x47   : > { %497 = vst.msk [vmem:[#allocation2 + $0x19] sm:$0xff] %vm440_vm0, %v408_v25 }
  0x48   : > { %498 = vst.msk [vmem:[#allocation2 + $0x21] sm:$0xff] %vm440_vm0, %v409_v27  ;;  %v321_v27 = vld [vmem:[%s2207_s22 + $0x88] sm:$0xff] }
  0x49   : > { %499 = vst.msk [vmem:[#allocation2 + $0x31] sm:$0xff] %vm440_vm0, %v410_v29  ;;  %v357_v29 = vmul.f32 %v2214_v2, %v321_v27  ;;  %v331_v27 = vld [vmem:[%s2207_s22 + $0xd8] sm:$0xff] }
  0x4a   : > { %500 = vst.msk [vmem:[#allocation2 + $0x39] sm:$0xff] %vm440_vm0, %v411_v31 }
  0x4b   : > { %501 = vst.msk [vmem:[#allocation2 + $0x49] sm:$0xff] %vm440_vm0, %v412_v33  ;;  %v393_v31 = vadd.f32 %v2231_v7, %v357_v29  ;;  %v367_v29 = vmul.f32 %v2214_v2, %v331_v27 }
  0x4c   : > { %502 = vst.msk [vmem:[#allocation2 + $0x51] sm:$0xff] %vm440_vm0, %v413_v34  ;;  %v424_v34 = vmax.f32 %v392_v30, 0.0 }
  0x4d   : > { %503 = vst.msk [vmem:[#allocation2 + $0x61] sm:$0xff] %vm440_vm0, %v414_v35  ;;  %v425_v35 = vmax.f32 %v393_v31, 0.0 }
  0x4e   : > { %504 = vst.msk [vmem:[#allocation2 + $0x69] sm:$0xff] %vm440_vm0, %v415_v36 }
  0x4f   : > { %v666_v43 = vld [vmem:[#allocation2 + $0x18] ss:$2 sm:$0xff]  ;;  %505 = vst.msk [vmem:[#allocation2 + $0x79] sm:$0xff] %vm440_vm0, %v416_v45  ;;  %v723_v51 = vld [vmem:[#allocation2 + $0x19] ss:$2 sm:$0xff]  ;;  %v426_v45 = vmax.f32 %v394_v41, 0.0 }
  0x50   : > { %v780_v44 = vld [vmem:[#allocation2 + $0x1a] ss:$2 sm:$0xff]  ;;  %689 = vrot.lane.b32.xlu1 %v666_v43, %s2869_s12  ;;  %506 = vst.msk [vmem:[#allocation2 + $0x81] sm:$0xff] %vm440_vm0, %v417_v46  ;;  %v427_v46 = vmax.f32 %v395_v42, 0.0  ;;  %v1017_v42 = vld [vmem:[%s2863_s3 + $0x10] sm:$0xff] }
  0x51   : > { %803 = vrot.lane.b32.xlu2 %v780_v44, %s2028_s13  ;;  %v894_v47 = vld [vmem:[#allocation2 + $0x31] ss:$2 sm:$0xff]  ;;  %v837_v52 = vld [vmem:[#allocation2 + $0x30] ss:$2 sm:$0xff]  ;;  %507 = vst.msk [vmem:[#allocation2 + $0x91] sm:$0xff] %vm440_vm0, %v418_v57  ;;  %v428_v57 = vmax.f32 %v396_v54, 0.0 }
  0x52   : > { %917 = vrot.lane.b32.xlu0 %v894_v47, %s2029_s18  ;;  %v612_v55 = vld [vmem:[#allocation2 + $0x32] ss:$2 sm:$0xff]  ;;  %508 = vst.msk [vmem:[#allocation2 + $0x99] sm:$0xff] %vm440_vm0, %v419_v58  ;;  %v555_v60 = vld [vmem:[#allocation2 + $0x31] ss:$2 sm:$0xff] }
  0x53   : > { %v951_v59 = vld [vmem:[#allocation2 + $0x32] ss:$2 sm:$0xff]  ;;  %v725_v5 = vld [vmem:[#allocation2 + $0x49] ss:$2 sm:$0xff]  ;;  %509 = vst.msk [vmem:[#allocation2 + $0xa9] sm:$0xff] %vm440_vm0, %v420_v10 }
  0x54   : > { %v782_v61 = vld [vmem:[#allocation2 + $0x4a] ss:$2 sm:$0xff]  ;;  %510 = vst.msk [vmem:[#allocation2 + $0xb1] sm:$0xff] %vm440_vm0, %v421_v11 }
  0x55   : > { %v668_v4 = vld [vmem:[#allocation2 + $0x48] ss:$2 sm:$0xff]  ;;  %v896_v17 = vld [vmem:[#allocation2 + $0x61] ss:$2 sm:$0xff]  ;;  %511 = vst.msk [vmem:[#allocation2 + $0xc1] sm:$0xff] %vm440_vm0, %v422_v21  ;;  %v1018_v41 = vld [vmem:[%s2863_s3 + $0x18] sm:$0xff] }
  0x56   : > { %v953_v9 = vld [vmem:[#allocation2 + $0x62] ss:$2 sm:$0xff]  ;;  %512 = vst.msk [vmem:[#allocation2 + $0xc9] sm:$0xff] %vm440_vm0, %v423_v22  ;;  %v557_v23 = vld [vmem:[#allocation2 + $0x61] ss:$2 sm:$0xff]  ;;  %v401_v22 = vadd.f32 %v2231_v7, %v365_v19 }
  0x57   : > { %v839_v16 = vld [vmem:[#allocation2 + $0x60] ss:$2 sm:$0xff]  ;;  %v727_v32 = vld [vmem:[#allocation2 + $0x79] ss:$2 sm:$0xff]  ;;  %513 = vst.msk [vmem:[#allocation2 + $0xd9] sm:$0xff] %vm440_vm0, %v424_v34 }
  0x58   : > { %746 = vrot.lane.b32.xlu1 %v723_v51, %s2030_s19  ;;  %v670_v20 = vld [vmem:[#allocation2 + $0x78] ss:$2 sm:$0xff]  ;;  %514 = vst.msk [vmem:[#allocation2 + $0xe1] sm:$0xff] %vm440_vm0, %v425_v35  ;;  %v361_v51 = vmul.f32 %v2214_v2, %v325_v49  ;;  %v333_v49 = vld [vmem:[%s2207_s22 + $0xe8] sm:$0xff] }
  0x59   : > { %860 = vrot.lane.b32.xlu2 %v837_v52, %s2031_s20  ;;  %v614_v24 = vld [vmem:[#allocation2 + $0x62] ss:$2 sm:$0xff]  ;;  %v559_v36 = vld [vmem:[#allocation2 + $0x91] ss:$2 sm:$0xff]  ;;  %v955_v44 = vld [vmem:[#allocation2 + $0x92] ss:$2 sm:$0xff] }
  0x5a   : > { %635 = vrot.lane.b32.xlu0 %v612_v55, %s2026_s10  ;;  %v841_v25 = vld [vmem:[#allocation2 + $0x90] ss:$2 sm:$0xff]  ;;  %v898_v43 = vld [vmem:[#allocation2 + $0x91] ss:$2 sm:$0xff]  ;;  %515 = vst.msk [vmem:[#allocation2 + $0xf1] sm:$0xff] %vm440_vm0, %v426_v45  ;;  %v397_v55 = vadd.f32 %v2231_v7, %v361_v51  ;;  %v1016_v45 = vld [vmem:[%s2863_s3 + $0x8] sm:$0xff]  ;;  %v368_v51 = vmul.f32 %v2214_v2, %v332_v48 }
  0x5b   : > { %v784_v33 = vld [vmem:[#allocation2 + $0x7a] ss:$2 sm:$0xff]  ;;  %v729_v47 = vld [vmem:[#allocation2 + $0xa9] ss:$2 sm:$0xff]  ;;  %516 = vst.msk [vmem:[#allocation2 + $0xf9] sm:$0xff] %vm440_vm0, %v427_v46 }
  0x5c   : > { %v616_v52 = vld [vmem:[#allocation2 + $0x92] ss:$2 sm:$0xff]  ;;  %v429_v58 = vmax.f32 %v397_v55, 0.0  ;;  %517 = vst.msk [vmem:[#allocation2 + $0x109] sm:$0xff] %vm440_vm0, %v428_v57 }
  0x5d   : > { %v672_v53 = vld [vmem:[#allocation2 + $0xa8] ss:$2 sm:$0xff]  ;;  %v900_v56 = vld [vmem:[#allocation2 + $0xc1] ss:$2 sm:$0xff]  ;;  %544 = vst.msk [vmem:[#allocation4] sm:$0xff] %vm440_vm0, %v529_v6 }
  0x5e   : > { %518 = vst.msk [vmem:[#allocation2 + $0x111] sm:$0xff] %vm440_vm0, %v429_v58  ;;  %v786_v63 = vld [vmem:[#allocation2 + $0xaa] ss:$2 sm:$0xff]  ;;  %v561_v12 = vld [vmem:[#allocation2 + $0xc1] ss:$2 sm:$0xff] }
  0x5f   : > { %v843_v1 = vld [vmem:[#allocation2 + $0xc0] ss:$2 sm:$0xff]  ;;  %v731_v18 = vld [vmem:[#allocation2 + $0xd9] ss:$2 sm:$0xff]  ;;  %v531_v40 = vld [vmem:[#allocation2 + $0x30] ss:$2 sm:$0xff] }
  0x60   : > { %974 = vrot.lane.b32.xlu1 %v951_v59, %s2871_s21  ;;  %v326_v59 = vld [vmem:[%s2207_s22 + $0xb0] sm:$0xff]  ;;  %v788_v13 = vld [vmem:[#allocation2 + $0xda] ss:$2 sm:$0xff]  ;;  %545 = vst.msk [vmem:[#allocation4 + $0x8] sm:$0xff] %vm440_vm0, %v531_v40 }
  0x61   : > { %578 = vrot.lane.b32.xlu2 %v555_v60, %s2025_s17  ;;  %v327_v60 = vld [vmem:[%s2207_s22 + $0xb8] sm:$0xff]  ;;  %v957_v11 = vld [vmem:[#allocation2 + $0xc2] ss:$2 sm:$0xff]  ;;  %1126 = vst.msk [vmem:[#allocation3 + $0x10] sm:$0xff] %vm1122_vm12, %v2024_v0 }
  0x62   : > { %805 = vrot.lane.b32.xlu0 %v782_v61, %s2028_s13  ;;  %v362_v61 = vmul.f32 %v2214_v2, %v326_v59  ;;  %v363_v62 = vmul.f32 %v2214_v2, %v327_v60  ;;  %v959_v21 = vld [vmem:[#allocation2 + $0xf2] ss:$2 sm:$0xff]  ;;  %v902_v31 = vld [vmem:[#allocation2 + $0xf1] ss:$2 sm:$0xff]  ;;  %1127 = vst.msk [vmem:[#allocation3 + $0x18] sm:$0x3] %vm1124_vm13, %v2024_v0 }
  0x63   : > { %v845_v30 = vld [vmem:[#allocation2 + $0xf0] ss:$2 sm:$0xff]  ;;  %1123 = vst.msk [vmem:[#allocation3] sm:$0xff] %vm1122_vm12, %v2024_v0 }
  0x64   : > { %v398_v3 = vadd.f32 %v2231_v7, %v362_v61  ;;  %v334_v60 = vld [vmem:[%s2207_s22 + $0xf0] sm:$0xff]  ;;  %v335_v61 = vld [vmem:[%s2207_s22 + $0xf8] sm:$0xff]  ;;  %s2877_s22 = smov 32   ;;  %1125 = vst.msk [vmem:[#allocation3 + $0x8] sm:$0x3] %vm1124_vm13, %v2024_v0 }
  0x65   : > { %v676_v34 = vld [vmem:[#allocation2 + $0x108] ss:$2 sm:$0xff]  ;;  %v733_v55 = vld [vmem:[#allocation2 + $0x109] ss:$2 sm:$0xff]  ;;  %1128 = vst.msk [vmem:[#allocation3 + $0x20] sm:$0xff] %vm1122_vm12, %v2024_v0 }
  0x66   : > { %v430_v8 = vmax.f32 %v398_v3, 0.0  ;;  %v535_v27 = vld [vmem:[#allocation2 + $0x90] ss:$2 sm:$0xff]  ;;  %1129 = vst.msk [vmem:[#allocation3 + $0x28] sm:$0x3] %vm1124_vm13, %v2024_v0 }
  0x67   : > { %547 = vst.msk [vmem:[#allocation4 + $0x18] sm:$0xff] %vm440_vm0, %v535_v27  ;;  %v2586_v27 = vld [vmem:[%s2865_s5] ss:$0 sm:$0xff] }
  0x68   : > { %691 = vrot.lane.b32.xlu1 %v668_v4, %s2869_s12  ;;  %v399_v4 = vadd.f32 %v2231_v7, %v363_v62  ;;  %519 = vst.msk [vmem:[#allocation2 + $0x121] sm:$0xff] %vm440_vm0, %v430_v8 }
  0x69   : > { %748 = vrot.lane.b32.xlu2 %v725_v5, %s2030_s19  ;;  %v618_v5 = vld [vmem:[#allocation2 + $0xc2] ss:$2 sm:$0xff]  ;;  %1130 = vst.msk [vmem:[#allocation3 + $0x30] sm:$0xff] %vm1122_vm12, %v2024_v0 }
  0x6a   : > { %976 = vrot.lane.b32.xlu0 %v953_v9, %s2871_s21  ;;  %v431_v10 = vmax.f32 %v399_v4, 0.0  ;;  %v371_v4 = vmul.f32 %v2214_v2, %v335_v61  ;;  %1131 = vst.msk [vmem:[#allocation3 + $0x38] sm:$0x3] %vm1124_vm13, %v2024_v0 }
  0x6b   : > { %1132 = vst.msk [vmem:[#allocation3 + $0x40] sm:$0xff] %vm1122_vm12, %v2024_v0 }
  0x6c   : > { %520 = vst.msk [vmem:[#allocation2 + $0x129] sm:$0xff] %vm440_vm0, %v431_v10 }
  0x6d   : > { %1133 = vst.msk [vmem:[#allocation3 + $0x48] sm:$0x3] %vm1124_vm13, %v2024_v0 }
  0x6e   : > { %1134 = vst.msk [vmem:[#allocation3 + $0x50] sm:$0xff] %vm1122_vm12, %v2024_v0 }
  0x6f   : > { %1135 = vst.msk [vmem:[#allocation3 + $0x58] sm:$0x3] %vm1124_vm13, %v2024_v0 }
  0x70   : > { %862 = vrot.lane.b32.xlu1 %v839_v16, %s2031_s20  ;;  %v364_v16 = vmul.f32 %v2214_v2, %v328_v14  ;;  %1136 = vst.msk [vmem:[#allocation3 + $0x60] sm:$0xff] %vm1122_vm12, %v2024_v0 }
  0x71   : > { %919 = vrot.lane.b32.xlu2 %v896_v17, %s2029_s18  ;;  %v674_v17 = vld [vmem:[#allocation2 + $0xd8] ss:$2 sm:$0xff]  ;;  %1137 = vst.msk [vmem:[#allocation3 + $0x68] sm:$0x3] %vm1124_vm13, %v2024_v0 }
  0x72   : > { %693 = vrot.lane.b32.xlu0 %v670_v20, %s2869_s12  ;;  %v400_v20 = vadd.f32 %v2231_v7, %v364_v16  ;;  %1138 = vst.msk [vmem:[#allocation3 + $0x70] sm:$0xff] %vm1122_vm12, %v2024_v0 }
  0x73   : > { %v847_v46 = vld [vmem:[#allocation2 + $0x120] ss:$2 sm:$0xff]  ;;  %v565_v59 = vld [vmem:[#allocation2 + $0x121] ss:$2 sm:$0xff]  ;;  %1139 = vst.msk [vmem:[#allocation3 + $0x78] sm:$0x3] %vm1124_vm13, %v2024_v0 }
  0x74   : > { %v904_v6 = vld [vmem:[#allocation2 + $0x121] ss:$2 sm:$0xff]  ;;  %v961_v8 = vld [vmem:[#allocation2 + $0x122] ss:$2 sm:$0xff]  ;;  %1140 = vst.msk [vmem:[#allocation3 + $0x80] sm:$0xff] %vm1122_vm12, %v2024_v0 }
  0x75   : > { %1141 = vst.msk [vmem:[#allocation3 + $0x88] sm:$0x3] %vm1124_vm13, %v2024_v0 }
  0x76   : > { %1142 = vst.msk [vmem:[#allocation3 + $0x90] sm:$0xff] %vm1122_vm12, %v2024_v0 }
  0x77   : > { %1143 = vst.msk [vmem:[#allocation3 + $0x98] sm:$0x3] %vm1124_vm13, %v2024_v0 }
  0x78   : > { %580 = vrot.lane.b32.xlu1 %v557_v23, %s2025_s17  ;;  %v432_v23 = vmax.f32 %v400_v20, 0.0 }
  0x79   : > { %637 = vrot.lane.b32.xlu2 %v614_v24, %s2026_s10  ;;  %v433_v24 = vmax.f32 %v401_v22, 0.0 }
  0x7a   : > { %864 = vrot.lane.b32.xlu0 %v841_v25, %s2031_s20  ;;  %521 = vst.msk [vmem:[#allocation2 + $0x139] sm:$0xff] %vm440_vm0, %v432_v23 }
  0x7b   : > { %522 = vst.msk [vmem:[#allocation2 + $0x141] sm:$0xff] %vm440_vm0, %v433_v24 }
  0x7d   : > { %v1422_v0 = vld [vmem:[#allocation3 + $0x90] sm:$0xff] }
  0x80   : > { %750 = vrot.lane.b32.xlu1 %v727_v32, %s2030_s19  ;;  %v402_v32 = vadd.f32 %v2231_v7, %v366_v28 }
  0x81   : > { %807 = vrot.lane.b32.xlu2 %v784_v33, %s2028_s13  ;;  %v403_v33 = vadd.f32 %v2231_v7, %v367_v29 }
  0x82   : > { %582 = vrot.lane.b32.xlu0 %v559_v36, %s2025_s17  ;;  %v1019_v36 = vld [vmem:[%s2863_s3 + $0x20] sm:$0xf]  ;;  %v434_v37 = vmax.f32 %v402_v32, 0.0 }
  0x83   : > { %1861 = vmatpush.msk.msra.mxu0 %vm1045_vm4, %v1019_v36  ;;  %v435_v38 = vmax.f32 %v403_v33, 0.0  ;;  %v735_v10 = vld [vmem:[#allocation2 + $0x139] ss:$2 sm:$0xff]  ;;  %v678_v16 = vld [vmem:[#allocation2 + $0x138] ss:$2 sm:$0xff] }
  0x84   : > { %523 = vst.msk [vmem:[#allocation2 + $0x151] sm:$0xff] %vm440_vm0, %v434_v37 }
  0x85   : > { %1061 = vmatpush.msra.mxu0 %v1018_v41  ;;  %524 = vst.msk [vmem:[#allocation2 + $0x159] sm:$0xff] %vm440_vm0, %v435_v38 }
  0x87   : > { %1062 = vmatpush.msra.mxu0 %v1017_v42 }
  0x88   : > { %921 = vrot.lane.b32.xlu1 %v898_v43, %s2029_s18  ;;  %v563_v43 = vld [vmem:[#allocation2 + $0xf1] ss:$2 sm:$0xff] }
  0x89   : > { %978 = vrot.lane.b32.xlu2 %v955_v44, %s2871_s21  ;;  %v620_v44 = vld [vmem:[#allocation2 + $0xf2] ss:$2 sm:$0xff]  ;;  %1063 = vmatpush.msra.mxu0 %v1016_v45 }
  0x8a   : > { %752 = vrot.lane.b32.xlu0 %v729_v47, %s2030_s19  ;;  %v1015_v47 = vld [vmem:[%s2863_s3] sm:$0xff] }
  0x8b   : > { %1064 = vmatpush.msra.mxu0 %v1015_v47  ;;  %v537_v47 = vld [vmem:[#allocation2 + $0xc0] ss:$2 sm:$0xff] }
  0x8c   : > { %v849_v22 = vld [vmem:[#allocation2 + $0x150] ss:$2 sm:$0xff]  ;;  %548 = vst.msk [vmem:[#allocation4 + $0x20] sm:$0xff] %vm440_vm0, %v537_v47 }
  0x8d   : > { %v624_v23 = vld [vmem:[#allocation2 + $0x152] ss:$2 sm:$0xff] }
  0x8e   : > { %v963_v29 = vld [vmem:[#allocation2 + $0x152] ss:$2 sm:$0xff] }
  0x8f   : > { %v577_v9 = vpop.permute.xlu0 %576 }
  0x90   : > { %639 = vrot.lane.b32.xlu1 %v616_v52, %s2026_s10  ;;  %601 = vst.msk [vmem:[#allocation4] sm:$0xff] %vm600_vm2, %v577_v9  ;;  %v369_v52 = vmul.f32 %v2214_v2, %v333_v49 }
  0x91   : > { %695 = vrot.lane.b32.xlu2 %v672_v53, %s2869_s12  ;;  %v404_v53 = vadd.f32 %v2231_v7, %v368_v51 }
  0x92   : > { %923 = vrot.lane.b32.xlu0 %v900_v56, %s2029_s18  ;;  %v405_v54 = vadd.f32 %v2231_v7, %v369_v52  ;;  %v790_v56 = vld [vmem:[#allocation2 + $0x10a] ss:$2 sm:$0xff] }
  0x93   : > { %v436_v57 = vmax.f32 %v404_v53, 0.0 }
  0x94   : > { %v437_v58 = vmax.f32 %v405_v54, 0.0 }
  0x95   : > { %525 = vst.msk [vmem:[#allocation2 + $0x169] sm:$0xff] %vm440_vm0, %v436_v57 }
  0x96   : > { %526 = vst.msk [vmem:[#allocation2 + $0x171] sm:$0xff] %vm440_vm0, %v437_v58 }
  0x98   : > { %809 = vrot.lane.b32.xlu1 %v786_v63, %s2028_s13 }
  0x99   : > { %866 = vrot.lane.b32.xlu2 %v843_v1, %s2031_s20  ;;  %v370_v1 = vmul.f32 %v2214_v2, %v334_v60 }
  0x9a   : > { %641 = vrot.lane.b32.xlu0 %v618_v5, %s2026_s10 }
  0x9b   : > { %v406_v5 = vadd.f32 %v2231_v7, %v370_v1 }
  0x9d   : > { %v438_v9 = vmax.f32 %v406_v5, 0.0  ;;  %v737_v36 = vld [vmem:[#allocation2 + $0x169] ss:$2 sm:$0xff] }
  0x9f   : > { %527 = vst.msk [vmem:[#allocation2 + $0x181] sm:$0xff] %vm440_vm0, %v438_v9 }
  0xa0   : > { %980 = vrot.lane.b32.xlu1 %v957_v11, %s2871_s21  ;;  %v407_v11 = vadd.f32 %v2231_v7, %v371_v4  ;;  %v622_v7 = vld [vmem:[#allocation2 + $0x122] ss:$2 sm:$0xff] }
  0xa1   : > { %584 = vrot.lane.b32.xlu2 %v561_v12, %s2025_s17  ;;  %v533_v12 = vld [vmem:[#allocation2 + $0x60] ss:$2 sm:$0xff] }
  0xa2   : > { %811 = vrot.lane.b32.xlu0 %v788_v13, %s2028_s13  ;;  %546 = vst.msk [vmem:[#allocation4 + $0x10] sm:$0xff] %vm440_vm0, %v533_v12  ;;  %v439_v15 = vmax.f32 %v407_v11, 0.0  ;;  %v541_v4 = vld [vmem:[#allocation2 + $0x120] ss:$2 sm:$0xff] }
  0xa3   : > { %550 = vst.msk [vmem:[#allocation4 + $0x30] sm:$0xff] %vm440_vm0, %v541_v4 }
  0xa4   : > { %528 = vst.msk [vmem:[#allocation2 + $0x189] sm:$0xff] %vm440_vm0, %v439_v15  ;;  %v543_v15 = vld [vmem:[#allocation2 + $0x150] ss:$2 sm:$0xff] }
  0xa5   : > { %551 = vst.msk [vmem:[#allocation4 + $0x38] sm:$0xff] %vm440_vm0, %v543_v15 }
  0xa8   : > { %697 = vrot.lane.b32.xlu1 %v674_v17, %s2869_s12  ;;  %v906_v17 = vld [vmem:[#allocation2 + $0x151] ss:$2 sm:$0xff] }
  0xa9   : > { %754 = vrot.lane.b32.xlu2 %v731_v18, %s2030_s19 }
  0xaa   : > { %982 = vrot.lane.b32.xlu0 %v959_v21, %s2871_s21  ;;  %v792_v21 = vld [vmem:[#allocation2 + $0x13a] ss:$2 sm:$0xff] }
  0xab   : > { %v2392_v25 = vpop.permute.xlu2 %803  ;;  %v965_v37 = vld [vmem:[#allocation2 + $0x182] ss:$2 sm:$0xff] }
  0xac   : > { %v851_v42 = vld [vmem:[#allocation2 + $0x180] ss:$2 sm:$0xff] }
  0xb0   : > { %v634_v35 = vpop.permute.xlu0 %633  ;;  %868 = vrot.lane.b32.xlu1 %v845_v30, %s2031_s20  ;;  %v567_v30 = vld [vmem:[#allocation2 + $0x151] ss:$2 sm:$0xff] }
  0xb1   : > { %658 = vst.msk [vmem:[#allocation4] sm:$0xff] %vm657_vm3, %v634_v35  ;;  %925 = vrot.lane.b32.xlu2 %v902_v31, %s2029_s18  ;;  %v794_v31 = vld [vmem:[#allocation2 + $0x16a] ss:$2 sm:$0xff] }
  0xb2   : > { %699 = vrot.lane.b32.xlu0 %v676_v34, %s2869_s12  ;;  %s2878_s12 = smov 12   ;;  %v680_v35 = vld [vmem:[#allocation2 + $0x168] ss:$2 sm:$0xff] }
  0xb3   : > { %v2410_v39 = vpop.permute.xlu2 %860 }
  0xb8   : > { %586 = vrot.lane.b32.xlu1 %v563_v43, %s2025_s17  ;;  %v908_v43 = vld [vmem:[#allocation2 + $0x181] ss:$2 sm:$0xff] }
  0xb9   : > { %643 = vrot.lane.b32.xlu2 %v620_v44, %s2026_s10 }
  0xba   : > { %870 = vrot.lane.b32.xlu0 %v847_v46, %s2031_s20 }
  0xbb   : > { %v579_v50 = vpop.permute.xlu2 %578 }
  0xbc   : > { %602 = vst.msk [vmem:[#allocation4 + $0x8] sm:$0xff] %vm600_vm2, %v579_v50 }
  0xc0   : > { %756 = vrot.lane.b32.xlu1 %v733_v55, %s2030_s19  ;;  %v539_v55 = vld [vmem:[#allocation2 + $0xf0] ss:$2 sm:$0xff] }
  0xc1   : > { %813 = vrot.lane.b32.xlu2 %v790_v56, %s2028_s13  ;;  %549 = vst.msk [vmem:[#allocation4 + $0x28] sm:$0xff] %vm440_vm0, %v539_v55 }
  0xc2   : > { %v690_v62 = vpop.permute.xlu1 %689  ;;  %588 = vrot.lane.b32.xlu0 %v565_v59, %s2025_s17 }
  0xc3   : > { %v749_v63 = vpop.permute.xlu2 %748  ;;  %714 = vst.msk [vmem:[#allocation4] sm:$0xff] %vm713_vm5, %v690_v62 }
  0xc4   : > { %v918_v3 = vpop.permute.xlu0 %917 }
  0xc8   : > { %927 = vrot.lane.b32.xlu1 %v904_v6, %s2029_s18 }
  0xc9   : > { %984 = vrot.lane.b32.xlu2 %v961_v8, %s2877_s22 }
  0xca   : > { %v747_v13 = vpop.permute.xlu1 %746  ;;  %758 = vrot.lane.b32.xlu0 %v735_v10, %s2030_s19 }
  0xcb   : > { %v920_v2 = vpop.permute.xlu2 %919  ;;  %771 = vst.msk [vmem:[#allocation4] sm:$0xff] %vm770_vm6, %v747_v13 }
  0xcc   : > { %828 = vst.msk [vmem:[#allocation4] sm:$0xff] %vm827_vm7, %v2392_v25  ;;  %v636_v14 = vpop.permute.xlu0 %635 }
  0xcd   : > { %885 = vst.msk [vmem:[#allocation4] sm:$0xff] %vm884_vm8, %v2410_v39 }
  0xce   : > { %942 = vst.msk [vmem:[#allocation4] sm:$0xff] %vm941_vm9, %v918_v3 }
  0xcf   : > { %659 = vst.msk [vmem:[#allocation4 + $0x8] sm:$0xff] %vm657_vm3, %v636_v14 }
  0xd0   : > { %645 = vrot.lane.b32.xlu1 %v622_v7, %s2026_s10 }
  0xd1   : > { %701 = vrot.lane.b32.xlu2 %v678_v16, %s2878_s12 }
  0xd2   : > { %v975_v18 = vpop.permute.xlu1 %974  ;;  %929 = vrot.lane.b32.xlu0 %v906_v17, %s2029_s18 }
  0xd3   : > { %v638_v19 = vpop.permute.xlu2 %637  ;;  %999 = vst.msk [vmem:[#allocation4] sm:$0xff] %vm998_vm10, %v975_v18 }
  0xd4   : > { %v806_v20 = vpop.permute.xlu0 %805 }
  0xd8   : > { %815 = vrot.lane.b32.xlu1 %v792_v21, %s2028_s13  ;;  %v1218_v21 = vld [vmem:[#allocation3 + $0x2] sm:$0xff] }
  0xd9   : > { %872 = vrot.lane.b32.xlu2 %v849_v22, %s2031_s20  ;;  %v1169_v22 = vld [vmem:[#allocation3 + $0x1] sm:$0xff] }
  0xda   : > { %v692_v24 = vpop.permute.xlu1 %691  ;;  %v1007_v25 = vld [vmem:[#allocation4] sm:$0xff]  ;;  %647 = vrot.lane.b32.xlu0 %v624_v23, %s2026_s10 }
  0xdb   : > { %v808_v26 = vpop.permute.xlu2 %807  ;;  %715 = vst.msk [vmem:[#allocation4 + $0x8] sm:$0xff] %vm713_vm5, %v692_v24  ;;  %1862 = vmatmul.msk.f32.vlgmr.msra.gmra.mxu0 %vm1020_vm11, %v1007_v25 }
  0xdc   : > { %772 = vst.msk [vmem:[#allocation4 + $0x8] sm:$0xff] %vm770_vm6, %v749_v63  ;;  %v977_v28 = vpop.permute.xlu0 %976 }
  0xdd   : > { %829 = vst.msk [vmem:[#allocation4 + $0x8] sm:$0xff] %vm827_vm7, %v806_v20 }
  0xe0   : > { %986 = vrot.lane.b32.xlu1 %v963_v29, %s2877_s22 }
  0xe1   : > { %590 = vrot.lane.b32.xlu2 %v567_v30, %s2025_s17 }
  0xe2   : > { %v863_v32 = vpop.permute.xlu1 %862  ;;  %817 = vrot.lane.b32.xlu0 %v794_v31, %s2028_s13  ;;  %s2879_s13 = smov 56  }
  0xe3   : > { %v979_v33 = vpop.permute.xlu2 %978  ;;  %886 = vst.msk [vmem:[#allocation4 + $0x8] sm:$0xff] %vm884_vm8, %v863_v32 }
  0xe4   : > { %943 = vst.msk [vmem:[#allocation4 + $0x8] sm:$0xff] %vm941_vm9, %v920_v2  ;;  %v694_v34 = vpop.permute.xlu0 %693 }
  0xe5   : > { %1000 = vst.msk [vmem:[#allocation4 + $0x8] sm:$0xff] %vm998_vm10, %v977_v28 }
  0xe8   : > { %703 = vrot.lane.b32.xlu1 %v680_v35, %s2878_s12 }
  0xe9   : > { %760 = vrot.lane.b32.xlu2 %v737_v36, %s2030_s19 }
  0xea   : > { %v581_v38 = vpop.permute.xlu1 %580  ;;  %988 = vrot.lane.b32.xlu0 %v965_v37, %s2877_s22 }
  0xeb   : > { %v696_v39 = vpop.permute.xlu2 %695  ;;  %603 = vst.msk [vmem:[#allocation4 + $0x10] sm:$0xff] %vm600_vm2, %v581_v38 }
  0xec   : > { %660 = vst.msk [vmem:[#allocation4 + $0x10] sm:$0xff] %vm657_vm3, %v638_v19  ;;  %v1008_v40 = vld [vmem:[#allocation4 + $0x8] sm:$0xff]  ;;  %v865_v41 = vpop.permute.xlu0 %864 }
  0xed   : > { %716 = vst.msk [vmem:[#allocation4 + $0x10] sm:$0xff] %vm713_vm5, %v694_v34  ;;  %1863 = vmatmul.msk.f32.gmra.mxu0 %vm1020_vm11, %v1008_v40 }
  0xf0   : > { %874 = vrot.lane.b32.xlu1 %v851_v42, %s2031_s20 }
  0xf1   : > { %931 = vrot.lane.b32.xlu2 %v908_v43, %s2029_s18 }
  0xf2   : > { %v751_v44 = vpop.permute.xlu1 %750  ;;  %1445 = vrot.lane.b32.xlu0 %v1422_v0, %s2033_s23  ;;  %v1587_v0 = vld [vmem:[%s2867_s7] sm:$0xf] }
  0xf3   : > { %v867_v45 = vpop.permute.xlu2 %866  ;;  %773 = vst.msk [vmem:[#allocation4 + $0x10] sm:$0xff] %vm770_vm6, %v751_v44  ;;  %1870 = vmatpush.msk.msra.mxu1 %vm1045_vm4, %v1587_v0  ;;  %vm1455_vm4 = vcmask 458112  }
  0xf4   : > { %830 = vst.msk [vmem:[#allocation4 + $0x10] sm:$0xff] %vm827_vm7, %v808_v26  ;;  %v583_v46 = vpop.permute.xlu0 %582  ;;  %v2577_v26 = vld [vmem:[%s2864_s4] ss:$0 sm:$0xff] }
  0xf5   : > { %887 = vst.msk [vmem:[#allocation4 + $0x10] sm:$0xff] %vm884_vm8, %v865_v41 }
  0xf6   : > { %604 = vst.msk [vmem:[#allocation4 + $0x18] sm:$0xff] %vm600_vm2, %v583_v46 }
  0xf8   : > { %1185 = vrot.lane.b32.xlu1 %v1169_v22, %s2026_s10 }
  0xf9   : > { %1234 = vrot.lane.b32.xlu2 %v1218_v21, %s2030_s19 }
  0xfa   : > { %v922_v48 = vpop.permute.xlu1 %921 }
  0xfb   : > { %v585_v49 = vpop.permute.xlu2 %584  ;;  %944 = vst.msk [vmem:[#allocation4 + $0x10] sm:$0xff] %vm941_vm9, %v922_v48 }
  0xfc   : > { %1001 = vst.msk [vmem:[#allocation4 + $0x10] sm:$0xff] %vm998_vm10, %v979_v33  ;;  %v753_v50 = vpop.permute.xlu0 %752 }
  0xfd   : > { %605 = vst.msk [vmem:[#allocation4 + $0x20] sm:$0xff] %vm600_vm2, %v585_v49 }
 0x102   : > { %v640_v51 = vpop.permute.xlu1 %639 }
 0x103   : > { %v755_v52 = vpop.permute.xlu2 %754  ;;  %661 = vst.msk [vmem:[#allocation4 + $0x18] sm:$0xff] %vm657_vm3, %v640_v51  ;;  %v1009_v53 = vld [vmem:[#allocation4 + $0x10] sm:$0xff] }
 0x104   : > { %717 = vst.msk [vmem:[#allocation4 + $0x18] sm:$0xff] %vm713_vm5, %v696_v39  ;;  %1864 = vmatmul.msk.f32.gmra.mxu0 %vm1020_vm11, %v1009_v53  ;;  %v924_v54 = vpop.permute.xlu0 %923 }
 0x105   : > { %774 = vst.msk [vmem:[#allocation4 + $0x18] sm:$0xff] %vm770_vm6, %v753_v50 }
 0x10a   : > { %v810_v56 = vpop.permute.xlu1 %809 }
 0x10b   : > { %v926_v57 = vpop.permute.xlu2 %925  ;;  %831 = vst.msk [vmem:[#allocation4 + $0x18] sm:$0xff] %vm827_vm7, %v810_v56 }
 0x10c   : > { %888 = vst.msk [vmem:[#allocation4 + $0x18] sm:$0xff] %vm884_vm8, %v867_v45  ;;  %v642_v58 = vpop.permute.xlu0 %641 }
 0x10d   : > { %945 = vst.msk [vmem:[#allocation4 + $0x18] sm:$0xff] %vm941_vm9, %v924_v54 }
 0x10e   : > { %662 = vst.msk [vmem:[#allocation4 + $0x20] sm:$0xff] %vm657_vm3, %v642_v58 }
 0x112   : > { %v981_v59 = vpop.permute.xlu1 %980 }
 0x113   : > { %v644_v60 = vpop.permute.xlu2 %643  ;;  %1002 = vst.msk [vmem:[#allocation4 + $0x18] sm:$0xff] %vm998_vm10, %v981_v59 }
 0x114   : > { %v812_v61 = vpop.permute.xlu0 %811 }
 0x11a   : > { %v698_v62 = vpop.permute.xlu1 %697  ;;  %v1010_v63 = vld [vmem:[#allocation4 + $0x18] sm:$0xff] }
 0x11b   : > { %v814_v1 = vpop.permute.xlu2 %813  ;;  %718 = vst.msk [vmem:[#allocation4 + $0x20] sm:$0xff] %vm713_vm5, %v698_v62  ;;  %1865 = vmatmul.msk.f32.gmra.mxu0 %vm1020_vm11, %v1010_v63 }
 0x11c   : > { %775 = vst.msk [vmem:[#allocation4 + $0x20] sm:$0xff] %vm770_vm6, %v755_v52  ;;  %v983_v3 = vpop.permute.xlu0 %982 }
 0x11d   : > { %832 = vst.msk [vmem:[#allocation4 + $0x20] sm:$0xff] %vm827_vm7, %v812_v61 }
 0x122   : > { %v869_v5 = vpop.permute.xlu1 %868 }
 0x123   : > { %v985_v6 = vpop.permute.xlu2 %984  ;;  %889 = vst.msk [vmem:[#allocation4 + $0x20] sm:$0xff] %vm884_vm8, %v869_v5 }
 0x124   : > { %946 = vst.msk [vmem:[#allocation4 + $0x20] sm:$0xff] %vm941_vm9, %v926_v57  ;;  %v700_v8 = vpop.permute.xlu0 %699 }
 0x125   : > { %1003 = vst.msk [vmem:[#allocation4 + $0x20] sm:$0xff] %vm998_vm10, %v983_v3 }
 0x12a   : > { %v587_v9 = vpop.permute.xlu1 %586 }
 0x12b   : > { %v702_v10 = vpop.permute.xlu2 %701  ;;  %606 = vst.msk [vmem:[#allocation4 + $0x28] sm:$0xff] %vm600_vm2, %v587_v9 }
 0x12c   : > { %663 = vst.msk [vmem:[#allocation4 + $0x28] sm:$0xff] %vm657_vm3, %v644_v60  ;;  %v1011_v11 = vld [vmem:[#allocation4 + $0x20] sm:$0xff]  ;;  %v871_v12 = vpop.permute.xlu0 %870 }
 0x12d   : > { %719 = vst.msk [vmem:[#allocation4 + $0x28] sm:$0xff] %vm713_vm5, %v700_v8  ;;  %1866 = vmatmul.msk.f32.gmra.mxu0 %vm1020_vm11, %v1011_v11 }
 0x132   : > { %v757_v13 = vpop.permute.xlu1 %756 }
 0x133   : > { %v873_v2 = vpop.permute.xlu2 %872  ;;  %776 = vst.msk [vmem:[#allocation4 + $0x28] sm:$0xff] %vm770_vm6, %v757_v13 }
 0x134   : > { %833 = vst.msk [vmem:[#allocation4 + $0x28] sm:$0xff] %vm827_vm7, %v814_v1  ;;  %v589_v14 = vpop.permute.xlu0 %588 }
 0x135   : > { %890 = vst.msk [vmem:[#allocation4 + $0x28] sm:$0xff] %vm884_vm8, %v871_v12 }
 0x136   : > { %607 = vst.msk [vmem:[#allocation4 + $0x30] sm:$0xff] %vm600_vm2, %v589_v14 }
 0x13a   : > { %v928_v7 = vpop.permute.xlu1 %927 }
 0x13b   : > { %947 = vst.msk [vmem:[#allocation4 + $0x28] sm:$0xff] %vm941_vm9, %v928_v7  ;;  %v591_v17 = vpop.permute.xlu2 %590  ;;  %v1578_v7 = vld [vmem:[%s2866_s6 + $0x40] sm:$0xff] }
 0x13c   : > { %1004 = vst.msk [vmem:[#allocation4 + $0x28] sm:$0xff] %vm998_vm10, %v985_v6  ;;  %v759_v16 = vpop.permute.xlu0 %758  ;;  %v1153_v6 = vld [vmem:[#allocation3] sm:$0xff]  ;;  %1688 = vmatpush.msra.mxu2 %v1578_v7  ;;  %1894 = vmatpush.msra.mxu3 %v1578_v7 }
 0x13d   : > { %608 = vst.msk [vmem:[#allocation4 + $0x38] sm:$0xff] %vm600_vm2, %v591_v17  ;;  %v1576_v17 = vld [vmem:[%s2866_s6 + $0x30] sm:$0xff]  ;;  %vm1356_vm2 = vcmask 326912  }
 0x13e   : > { %1161 = vst.msk [vmem:[#allocation5] sm:$0xff] %vm1122_vm12, %v1153_v6  ;;  %v1471_v6 = vld [vmem:[#allocation3 + $0x91] sm:$0xff]  ;;  %v1582_v7 = vld [vmem:[#allocation2 + $0xa9] ss:$2 sm:$0xff] }
 0x142   : > { %v646_v18 = vpop.permute.xlu1 %645 }
 0x143   : > { %664 = vst.msk [vmem:[#allocation4 + $0x30] sm:$0xff] %vm657_vm3, %v646_v18  ;;  %v1012_v19 = vld [vmem:[#allocation4 + $0x28] sm:$0xff]  ;;  %v761_v28 = vpop.permute.xlu2 %760 }
 0x144   : > { %720 = vst.msk [vmem:[#allocation4 + $0x30] sm:$0xff] %vm713_vm5, %v702_v10  ;;  %1867 = vmatmul.msk.f32.gmra.mxu0 %vm1020_vm11, %v1012_v19  ;;  %v930_v20 = vpop.permute.xlu0 %929  ;;  %v1575_v19 = vld [vmem:[%s2866_s6 + $0x28] sm:$0xff] }
 0x145   : > { %777 = vst.msk [vmem:[#allocation4 + $0x30] sm:$0xff] %vm770_vm6, %v759_v16  ;;  %v1577_v16 = vld [vmem:[%s2866_s6 + $0x38] sm:$0xff] }
 0x146   : > { %1689 = vmatpush.msra.mxu2 %v1577_v16  ;;  %1895 = vmatpush.msra.mxu3 %v1577_v16 }
 0x148   : > { %1690 = vmatpush.msra.mxu2 %v1576_v17  ;;  %1896 = vmatpush.msra.mxu3 %v1576_v17 }
 0x14a   : > { %v816_v23 = vpop.permute.xlu1 %815  ;;  %1691 = vmatpush.msra.mxu2 %v1575_v19  ;;  %1897 = vmatpush.msra.mxu3 %v1575_v19 }
 0x14b   : > { %834 = vst.msk [vmem:[#allocation4 + $0x30] sm:$0xff] %vm827_vm7, %v816_v23  ;;  %v932_v36 = vpop.permute.xlu2 %931 }
 0x14c   : > { %891 = vst.msk [vmem:[#allocation4 + $0x30] sm:$0xff] %vm884_vm8, %v873_v2  ;;  %v648_v24 = vpop.permute.xlu0 %647 }
 0x14d   : > { %948 = vst.msk [vmem:[#allocation4 + $0x30] sm:$0xff] %vm941_vm9, %v930_v20  ;;  %v1574_v20 = vld [vmem:[%s2866_s6 + $0x20] sm:$0xff] }
 0x14e   : > { %665 = vst.msk [vmem:[#allocation4 + $0x38] sm:$0xff] %vm657_vm3, %v648_v24  ;;  %1692 = vmatpush.msra.mxu2 %v1574_v20  ;;  %1898 = vmatpush.msra.mxu3 %v1574_v20  ;;  %vm1405_vm3 = vcmask 392512  }
 0x152   : > { %v987_v25 = vpop.permute.xlu1 %986 }
 0x153   : > { %1005 = vst.msk [vmem:[#allocation4 + $0x30] sm:$0xff] %vm998_vm10, %v987_v25  ;;  %v1235_v11 = vpop.permute.xlu2 %1234  ;;  %v1573_v25 = vld [vmem:[%s2866_s6 + $0x18] sm:$0xff] }
 0x154   : > { %v818_v30 = vpop.permute.xlu0 %817  ;;  %1693 = vmatpush.msra.mxu2 %v1573_v25  ;;  %1899 = vmatpush.msra.mxu3 %v1573_v25 }
 0x158   : > { %v1066_v29 = vpop.f32.mrf.mxu0 }
 0x159   : > { %v1094_v31 = vmul.f32 %v2577_v26, %v1066_v29 }
 0x15a   : > { %v704_v32 = vpop.permute.xlu1 %703  ;;  %v1013_v33 = vld [vmem:[#allocation4 + $0x30] sm:$0xff] }
 0x15b   : > { %v1106_v34 = vadd.f32 %v2586_v27, %v1094_v31  ;;  %721 = vst.msk [vmem:[#allocation4 + $0x38] sm:$0xff] %vm713_vm5, %v704_v32  ;;  %1868 = vmatmul.msk.f32.gmra.mxu0 %vm1020_vm11, %v1013_v33  ;;  %v1570_v31 = vld [vmem:[%s2866_s6] sm:$0xff]  ;;  %vm1504_vm5 = vcmask 523712  }
 0x15c   : > { %778 = vst.msk [vmem:[#allocation4 + $0x38] sm:$0xff] %vm770_vm6, %v761_v28  ;;  %v989_v38 = vpop.permute.xlu0 %988  ;;  %v1572_v28 = vld [vmem:[%s2866_s6 + $0x10] sm:$0xff]  ;;  %vm1553_vm6 = vcmask 589312  }
 0x15d   : > { %v1114_v35 = vmax.f32 %v1106_v34, 0.0  ;;  %835 = vst.msk [vmem:[#allocation4 + $0x38] sm:$0xff] %vm827_vm7, %v818_v30  ;;  %v1571_v30 = vld [vmem:[%s2866_s6 + $0x8] sm:$0xff]  ;;  %1694 = vmatpush.msra.mxu2 %v1572_v28  ;;  %1900 = vmatpush.msra.mxu3 %v1572_v28  ;;  %vm1656_vm7 = vcmask 588800  }
 0x15f   : > { %1145 = vst.msk [vmem:[#allocation3 + $0x11] sm:$0xff] %vm1122_vm12, %v1114_v35  ;;  %1695 = vmatpush.msra.mxu2 %v1571_v30  ;;  %1901 = vmatpush.msra.mxu3 %v1571_v30  ;;  %v1583_v30 = vld [vmem:[#allocation2 + $0xd9] ss:$2 sm:$0xff] }
 0x161   : > { %1696 = vmatpush.msra.mxu2 %v1570_v31  ;;  %1902 = vmatpush.msra.mxu3 %v1570_v31 }
 0x162   : > { %v875_v37 = vpop.permute.xlu1 %874 }
 0x163   : > { %892 = vst.msk [vmem:[#allocation4 + $0x38] sm:$0xff] %vm884_vm8, %v875_v37 }
 0x164   : > { %949 = vst.msk [vmem:[#allocation4 + $0x38] sm:$0xff] %vm941_vm9, %v932_v36  ;;  %v2675_v24 = vpop.permute.xlu0 %1445 }
 0x165   : > { %1006 = vst.msk [vmem:[#allocation4 + $0x38] sm:$0xff] %vm998_vm10, %v989_v38 }
 0x166   : > { %v1365_v39 = vld [vmem:[#allocation3 + $0x12] sm:$0xff] }
 0x167   : > { %v1316_v40 = vld [vmem:[#allocation3 + $0x11] sm:$0xff]  ;;  %1381 = vrot.lane.b32.xlu2 %v1365_v39, %s2034_s24 }
 0x168   : > { %v1267_v41 = vld [vmem:[#allocation3 + $0x10] sm:$0xff]  ;;  %1332 = vrot.lane.b32.xlu1 %v1316_v40, %s2877_s22 }
 0x169   : > { %1162 = vst.msk [vmem:[#allocation5 + $0x8] sm:$0xff] %vm1122_vm12, %v1267_v41  ;;  %1283 = vrot.lane.b32.xlu0 %v1267_v41, %s2031_s20 }
 0x16a   : > { %v1069_v42 = vpop.f32.mrf.mxu0  ;;  %v1186_v10 = vpop.permute.xlu1 %1185 }
 0x16b   : > { %v1095_v43 = vmul.f32 %v2577_v26, %v1069_v42  ;;  %1210 = vst.msk [vmem:[#allocation5] sm:$0xff] %vm1209_vm14, %v1186_v10 }
 0x16c   : > { %v1014_v44 = vld [vmem:[#allocation4 + $0x38] sm:$0xff]  ;;  %1259 = vst.msk [vmem:[#allocation5] sm:$0xff] %vm1258_vm15, %v1235_v11 }
 0x16d   : > { %v1107_v45 = vadd.f32 %v2586_v27, %v1095_v43  ;;  %1869 = vmatmul.msk.f32.gmra.mxu0 %vm1020_vm11, %v1014_v44 }
 0x16f   : > { %v1115_v46 = vmax.f32 %v1107_v45, 0.0 }
 0x170   : > { %1236 = vrot.lane.b32.xlu1 %v1365_v39, %s2030_s19  ;;  %v1579_v39 = vld [vmem:[#allocation2 + $0x19] ss:$2 sm:$0xff] }
 0x171   : > { %1187 = vrot.lane.b32.xlu0 %v1316_v40, %s2026_s10  ;;  %1146 = vst.msk [vmem:[#allocation3 + $0x21] sm:$0xff] %vm1122_vm12, %v1115_v46  ;;  %1871 = vmatmul.msk.f32.vlgmr.msra.gmra.mxu1 %vm440_vm0, %v1579_v39 }
 0x178   : > { %v1513_v47 = vld [vmem:[#allocation3 + $0x22] sm:$0xff] }
 0x179   : > { %v1464_v48 = vld [vmem:[#allocation3 + $0x21] sm:$0xff]  ;;  %1529 = vrot.lane.b32.xlu2 %v1513_v47, %s2035_s25 }
 0x17a   : > { %v1415_v49 = vld [vmem:[#allocation3 + $0x20] sm:$0xff]  ;;  %1480 = vrot.lane.b32.xlu1 %v1464_v48, %s2873_s26 }
 0x17b   : > { %1163 = vst.msk [vmem:[#allocation5 + $0x10] sm:$0xff] %vm1122_vm12, %v1415_v49  ;;  %1431 = vrot.lane.b32.xlu0 %v1415_v49, %s2033_s23 }
 0x181   : > { %1285 = vrot.lane.b32.xlu2 %v1415_v49, %s2031_s20  ;;  %v1072_v50 = vpop.f32.mrf.mxu0 }
 0x182   : > { %1383 = vrot.lane.b32.xlu1 %v1513_v47, %s2034_s24  ;;  %v1096_v51 = vmul.f32 %v2577_v26, %v1072_v50 }
 0x183   : > { %1334 = vrot.lane.b32.xlu0 %v1464_v48, %s2877_s22 }
 0x184   : > { %v1108_v52 = vadd.f32 %v2586_v27, %v1096_v51 }
 0x186   : > { %v1116_v53 = vmax.f32 %v1108_v52, 0.0 }
 0x188   : > { %1147 = vst.msk [vmem:[#allocation3 + $0x31] sm:$0xff] %vm1122_vm12, %v1116_v53 }
 0x189   : > { %1189 = vrot.lane.b32.xlu2 %v1464_v48, %s2026_s10 }
 0x18b   : > { %1238 = vrot.lane.b32.xlu0 %v1513_v47, %s2030_s19 }
 0x18f   : > { %v1514_v54 = vld [vmem:[#allocation3 + $0x32] sm:$0xff] }
 0x190   : > { %v1465_v55 = vld [vmem:[#allocation3 + $0x31] sm:$0xff]  ;;  %1531 = vrot.lane.b32.xlu1 %v1514_v54, %s2035_s25 }
 0x191   : > { %v1416_v56 = vld [vmem:[#allocation3 + $0x30] sm:$0xff] }
 0x192   : > { %1164 = vst.msk [vmem:[#allocation5 + $0x18] sm:$0xff] %vm1122_vm12, %v1416_v56  ;;  %1433 = vrot.lane.b32.xlu2 %v1416_v56, %s2033_s23 }
 0x193   : > { %1482 = vrot.lane.b32.xlu0 %v1465_v55, %s2873_s26 }
 0x198   : > { %1287 = vrot.lane.b32.xlu1 %v1416_v56, %s2031_s20  ;;  %v1075_v57 = vpop.f32.mrf.mxu0 }
 0x199   : > { %v1097_v58 = vmul.f32 %v2577_v26, %v1075_v57 }
 0x19a   : > { %1336 = vrot.lane.b32.xlu2 %v1465_v55, %s2877_s22 }
 0x19b   : > { %1385 = vrot.lane.b32.xlu0 %v1514_v54, %s2034_s24  ;;  %v1109_v59 = vadd.f32 %v2586_v27, %v1097_v58 }
 0x19d   : > { %v1117_v60 = vmax.f32 %v1109_v59, 0.0 }
 0x19f   : > { %1148 = vst.msk [vmem:[#allocation3 + $0x41] sm:$0xff] %vm1122_vm12, %v1117_v60 }
 0x1a0   : > { %1191 = vrot.lane.b32.xlu1 %v1465_v55, %s2026_s10 }
 0x1a2   : > { %1240 = vrot.lane.b32.xlu2 %v1514_v54, %s2030_s19 }
 0x1a6   : > { %v1515_v61 = vld [vmem:[#allocation3 + $0x42] sm:$0xff] }
 0x1a7   : > { %v1417_v62 = vld [vmem:[#allocation3 + $0x40] sm:$0xff]  ;;  %1533 = vrot.lane.b32.xlu0 %v1515_v61, %s2035_s25 }
 0x1a8   : > { %1165 = vst.msk [vmem:[#allocation5 + $0x20] sm:$0xff] %vm1122_vm12, %v1417_v62  ;;  %1435 = vrot.lane.b32.xlu1 %v1417_v62, %s2033_s23  ;;  %v1466_v63 = vld [vmem:[#allocation3 + $0x41] sm:$0xff] }
 0x1aa   : > { %1484 = vrot.lane.b32.xlu2 %v1466_v63, %s2873_s26  ;;  %v1078_v1 = vpop.f32.mrf.mxu0 }
 0x1ab   : > { %v1098_v3 = vmul.f32 %v2577_v26, %v1078_v1 }
 0x1ad   : > { %v1110_v4 = vadd.f32 %v2586_v27, %v1098_v3 }
 0x1af   : > { %v1118_v5 = vmax.f32 %v1110_v4, 0.0  ;;  %1289 = vrot.lane.b32.xlu0 %v1417_v62, %s2031_s20  ;;  %v1581_v4 = vld [vmem:[#allocation2 + $0x79] ss:$2 sm:$0xff] }
 0x1b0   : > { %1338 = vrot.lane.b32.xlu1 %v1466_v63, %s2877_s22 }
 0x1b1   : > { %1149 = vst.msk [vmem:[#allocation3 + $0x51] sm:$0xff] %vm1122_vm12, %v1118_v5 }
 0x1b2   : > { %1387 = vrot.lane.b32.xlu2 %v1515_v61, %s2034_s24 }
 0x1b7   : > { %1193 = vrot.lane.b32.xlu0 %v1466_v63, %s2026_s10 }
 0x1b8   : > { %v1467_v8 = vld [vmem:[#allocation3 + $0x51] sm:$0xff] }
 0x1b9   : > { %v1418_v9 = vld [vmem:[#allocation3 + $0x50] sm:$0xff]  ;;  %1486 = vrot.lane.b32.xlu1 %v1467_v8, %s2873_s26 }
 0x1ba   : > { %1242 = vrot.lane.b32.xlu2 %v1515_v61, %s2030_s19  ;;  %1166 = vst.msk [vmem:[#allocation5 + $0x28] sm:$0xff] %vm1122_vm12, %v1418_v9  ;;  %v1516_v12 = vld [vmem:[#allocation3 + $0x52] sm:$0xff] }
 0x1bf   : > { %1437 = vrot.lane.b32.xlu0 %v1418_v9, %s2033_s23 }
 0x1c1   : > { %1291 = vrot.lane.b32.xlu1 %v1418_v9, %s2031_s20  ;;  %v1081_v13 = vpop.f32.mrf.mxu0  ;;  %v1382_v18 = vpop.permute.xlu2 %1381  ;;  %v1520_v9 = vld [vmem:[#allocation3 + $0x92] sm:$0xff] }
 0x1c2   : > { %1535 = vrot.lane.b32.xlu2 %v1516_v12, %s2035_s25  ;;  %v1099_v2 = vmul.f32 %v2577_v26, %v1081_v13 }
 0x1c4   : > { %v1111_v14 = vadd.f32 %v2586_v27, %v1099_v2 }
 0x1c6   : > { %v1119_v15 = vmax.f32 %v1111_v14, 0.0 }
 0x1c7   : > { %1340 = vrot.lane.b32.xlu0 %v1467_v8, %s2877_s22 }
 0x1c8   : > { %1150 = vst.msk [vmem:[#allocation3 + $0x61] sm:$0xff] %vm1122_vm12, %v1119_v15 }
 0x1c9   : > { %1195 = vrot.lane.b32.xlu1 %v1467_v8, %s2026_s10 }
 0x1ca   : > { %1389 = vrot.lane.b32.xlu2 %v1516_v12, %s2034_s24 }
 0x1cf   : > { %1244 = vrot.lane.b32.xlu0 %v1516_v12, %s2030_s19  ;;  %v1517_v21 = vld [vmem:[#allocation3 + $0x62] sm:$0xff] }
 0x1d0   : > { %v1175_v22 = vld [vmem:[#allocation3 + $0x61] sm:$0xff] }
 0x1d1   : > { %v1272_v23 = vld [vmem:[#allocation3 + $0x60] sm:$0xff]  ;;  %1197 = vrot.lane.b32.xlu1 %v1175_v22, %s2026_s10 }
 0x1d2   : > { %1167 = vst.msk [vmem:[#allocation5 + $0x30] sm:$0xff] %vm1122_vm12, %v1272_v23  ;;  %1537 = vrot.lane.b32.xlu2 %v1517_v21, %s2035_s25 }
 0x1d3   : > { %v1530_v29 = vpop.permute.xlu2 %1529 }
 0x1d7   : > { %1246 = vrot.lane.b32.xlu0 %v1517_v21, %s2030_s19 }
 0x1d8   : > { %v1084_v32 = vpop.f32.mrf.mxu0 }
 0x1d9   : > { %v1100_v33 = vmul.f32 %v2577_v26, %v1084_v32  ;;  %1439 = vrot.lane.b32.xlu1 %v1272_v23, %s2033_s23 }
 0x1da   : > { %1293 = vrot.lane.b32.xlu2 %v1272_v23, %s2031_s20  ;;  %v1333_v34 = vpop.permute.xlu1 %1332 }
 0x1db   : > { %v1284_v35 = vpop.permute.xlu0 %1283  ;;  %v1112_v36 = vadd.f32 %v2586_v27, %v1100_v33  ;;  %v1286_v37 = vpop.permute.xlu2 %1285 }
 0x1dc   : > { %1308 = vst.msk [vmem:[#allocation5] sm:$0xff] %vm1307_vm1, %v1284_v35 }
 0x1dd   : > { %1357 = vst.msk [vmem:[#allocation5] sm:$0xff] %vm1356_vm2, %v1333_v34  ;;  %v1120_v38 = vmax.f32 %v1112_v36, 0.0 }
 0x1de   : > { %1406 = vst.msk [vmem:[#allocation5] sm:$0xff] %vm1405_vm3, %v1382_v18 }
 0x1df   : > { %1151 = vst.msk [vmem:[#allocation3 + $0x71] sm:$0xff] %vm1122_vm12, %v1120_v38  ;;  %1488 = vrot.lane.b32.xlu0 %v1175_v22, %s2879_s13 }
 0x1e1   : > { %1342 = vrot.lane.b32.xlu1 %v1175_v22, %s2877_s22 }
 0x1e2   : > { %v1237_v40 = vpop.permute.xlu1 %1236 }
 0x1e3   : > { %v1188_v41 = vpop.permute.xlu0 %1187  ;;  %v1190_v42 = vpop.permute.xlu2 %1189 }
 0x1e4   : > { %1211 = vst.msk [vmem:[#allocation5 + $0x8] sm:$0xff] %vm1209_vm14, %v1188_v41 }
 0x1e5   : > { %1260 = vst.msk [vmem:[#allocation5 + $0x8] sm:$0xff] %vm1258_vm15, %v1237_v40 }
 0x1e6   : > { %1309 = vst.msk [vmem:[#allocation5 + $0x8] sm:$0xff] %vm1307_vm1, %v1286_v37  ;;  %v1273_v43 = vld [vmem:[#allocation3 + $0x70] sm:$0xff] }
 0x1e7   : > { %1212 = vst.msk [vmem:[#allocation5 + $0x10] sm:$0xff] %vm1209_vm14, %v1190_v42  ;;  %v1322_v44 = vld [vmem:[#allocation3 + $0x71] sm:$0xff]  ;;  %1391 = vrot.lane.b32.xlu0 %v1517_v21, %s2034_s24  ;;  %1295 = vrot.lane.b32.xlu2 %v1273_v43, %s2031_s20  ;;  %v1584_v42 = vld [vmem:[#allocation2 + $0x109] ss:$2 sm:$0xff] }
 0x1e8   : > { %1168 = vst.msk [vmem:[#allocation5 + $0x38] sm:$0xff] %vm1122_vm12, %v1273_v43  ;;  %v1371_v51 = vld [vmem:[#allocation3 + $0x72] sm:$0xff] }
 0x1e9   : > { %1344 = vrot.lane.b32.xlu1 %v1322_v44, %s2877_s22 }
 0x1ea   : > { %v1087_v45 = vpop.f32.mrf.mxu0 }
 0x1eb   : > { %v1101_v46 = vmul.f32 %v2577_v26, %v1087_v45  ;;  %v1585_v45 = vld [vmem:[#allocation2 + $0x139] ss:$2 sm:$0xff] }
 0x1ec   : > { %v1434_v47 = vpop.permute.xlu2 %1433  ;;  %v1481_v48 = vpop.permute.xlu1 %1480 }
 0x1ed   : > { %v1432_v49 = vpop.permute.xlu0 %1431  ;;  %v1113_v50 = vadd.f32 %v2586_v27, %v1101_v46  ;;  %v1580_v27 = vld [vmem:[#allocation2 + $0x49] ss:$2 sm:$0xff] }
 0x1ee   : > { %1456 = vst.msk [vmem:[#allocation5] sm:$0xff] %vm1455_vm4, %v1432_v49  ;;  %1872 = vmatmul.msk.f32.gmra.mxu1 %vm440_vm0, %v1580_v27 }
 0x1ef   : > { %1505 = vst.msk [vmem:[#allocation5] sm:$0xff] %vm1504_vm5, %v1481_v48  ;;  %v1121_v52 = vmax.f32 %v1113_v50, 0.0  ;;  %1393 = vrot.lane.b32.xlu0 %v1371_v51, %s2034_s24  ;;  %1199 = vrot.lane.b32.xlu2 %v1322_v44, %s2026_s10 }
 0x1f0   : > { %1554 = vst.msk [vmem:[#allocation5] sm:$0xff] %vm1553_vm6, %v1530_v29 }
 0x1f1   : > { %1152 = vst.msk [vmem:[#allocation3 + $0x81] sm:$0xff] %vm1122_vm12, %v1121_v52  ;;  %1248 = vrot.lane.b32.xlu1 %v1371_v51, %s2030_s19  ;;  %s296_s19 = sand.u32 1, %s2014_s28  }
 0x1f2   : > { %s1731_s12 = scalar_lea.sflag [#allocation7], %s296_s19 }
 0x1f4   : > { %v1337_v26 = vpop.permute.xlu2 %1336  ;;  %v1384_v53 = vpop.permute.xlu1 %1383 }
 0x1f5   : > { %v1335_v54 = vpop.permute.xlu0 %1334 }
 0x1f6   : > { %1358 = vst.msk [vmem:[#allocation5 + $0x8] sm:$0xff] %vm1356_vm2, %v1335_v54  ;;  %1873 = vmatmul.msk.f32.gmra.mxu1 %vm440_vm0, %v1581_v4 }
 0x1f7   : > { %1407 = vst.msk [vmem:[#allocation5 + $0x8] sm:$0xff] %vm1405_vm3, %v1384_v53  ;;  %v1562_v55 = vld [vmem:[#allocation5] sm:$0xff]  ;;  %1441 = vrot.lane.b32.xlu2 %v1273_v43, %s2033_s23 }
 0x1f8   : > { %1457 = vst.msk [vmem:[#allocation5 + $0x8] sm:$0xff] %vm1455_vm4, %v1434_v47  ;;  %1879 = vmatmul.msk.f32.vlgmr.msra.gmra.mxu2 %vm1656_vm7, %v1562_v55  ;;  %v1519_v56 = vld [vmem:[#allocation3 + $0x82] sm:$0xff] }
 0x1f9   : > { %1490 = vrot.lane.b32.xlu1 %v1322_v44, %s2879_s13  ;;  %1541 = vrot.lane.b32.xlu0 %v1519_v56, %s2035_s25  ;;  %v1421_v59 = vld [vmem:[#allocation3 + $0x80] sm:$0xff] }
 0x1fa   : > { %v1470_v60 = vld [vmem:[#allocation3 + $0x81] sm:$0xff] }
 0x1fc   : > { %v1241_v57 = vpop.permute.xlu2 %1240 }
 0x1fd   : > { %v1239_v58 = vpop.permute.xlu0 %1238 }
 0x1fe   : > { %1261 = vst.msk [vmem:[#allocation5 + $0x10] sm:$0xff] %vm1258_vm15, %v1239_v58  ;;  %1874 = vmatmul.msk.f32.gmra.mxu1 %vm440_vm0, %v1582_v7 }
 0x1ff   : > { %1443 = vrot.lane.b32.xlu2 %v1421_v59, %s2033_s23  ;;  %s1893_s23 = sshll.u32 %s2104_s9, 6 }
 0x200   : > { %s1742_s18 = scalar_lea.hbm %s2868_s8, %s1893_s23  ;;  %s1980_s23 = scalar_lea.hbm %s2868_s8, 128 }
 0x201   : > { %1492 = vrot.lane.b32.xlu1 %v1470_v60, %s2879_s13  ;;  %1297 = vrot.lane.b32.xlu0 %v1421_v59, %s2031_s20  ;;  %s1858_s20 = sshll.u32 %s296_s19, 6  ;;  %s1745_s21 = sshll.u32 %s1742_s18, 4  ;;  %s1746_s21 = int_to_ptr.hbm [resolvable:$true] %s1745_s21 }
 0x202   : > { %v1532_v61 = vpop.permute.xlu1 %1531  ;;  %s1974_s9 = sshra.s32 %s1746_s21, 4  ;;  %s1975_s9 = int_to_ptr.hbm [resolvable:$true] %s1974_s9 }
 0x203   : > { %s1976_s17 = scalar_lea.hbm %s1975_s9, 64  ;;  %p1981_p0 = scmp.lt.s32.totalorder %s1975_s9, %s2868_s8 }
 0x204   : > { %v1485_v62 = vpop.permute.xlu2 %1484  ;;  %p1977_p11 = scmp.ne.s32.totalorder %s1975_s9, %s1976_s17  ;;  %p1982_p1 = scmp.lt.s32.totalorder %s1980_s23, %s1976_s17 }
 0x205   : > { %v1483_v63 = vpop.permute.xlu0 %1482 }
 0x206   : > { %1506 = vst.msk [vmem:[#allocation5 + $0x8] sm:$0xff] %vm1504_vm5, %v1483_v63  ;;  %1875 = vmatmul.msk.f32.gmra.mxu1 %vm440_vm0, %v1583_v30  ;;  %p1978_p12 = pnand %p1977_p11, %p2121_p5  ;;  %p1983_p2 = por %p1982_p1, %p1981_p0 }
 0x207   : > { %1555 = vst.msk [vmem:[#allocation5 + $0x8] sm:$0xff] %vm1553_vm6, %v1532_v61  ;;  %1346 = vrot.lane.b32.xlu2 %v1470_v60, %s2877_s22  ;;  %s2799_s22 = scalar_lea.vmem [#allocation6], %s1858_s20 }
 0x208   : > { %s1743_s26 = sshll.u32 %s2799_s22, 4  ;;  %p1979_p13 = pneg %p1978_p12  ;;  %s1744_s26 = int_to_ptr.vmem [resolvable:$true] %s1743_s26 }
 0x209   : > { %1395 = vrot.lane.b32.xlu1 %v1519_v56, %s2034_s24  ;;  %1539 = vrot.lane.b32.xlu0 %v1371_v51, %s2035_s25  ;;  %v1586_v51 = vld [vmem:[#allocation2 + $0x169] ss:$2 sm:$0xff] }
 0x20a   : > { %v1288_v1 = vpop.permute.xlu1 %1287  ;;  %p1984_p3 = pnand %p1983_p2, %p1979_p13 }
 0x20b   : > { %1310 = vst.msk [vmem:[#allocation5 + $0x10] sm:$0xff] %vm1307_vm1, %v1288_v1 }
 0x20c   : > { %v1388_v3 = vpop.permute.xlu2 %1387  ;;  %1359 = vst.msk [vmem:[#allocation5 + $0x10] sm:$0xff] %vm1356_vm2, %v1337_v26  ;;  %v1632_v26 = vpop.f32.mrf.mxu1 }
 0x20d   : > { %v1386_v5 = vpop.permute.xlu0 %1385 }
 0x20e   : > { %1408 = vst.msk [vmem:[#allocation5 + $0x10] sm:$0xff] %vm1405_vm3, %v1386_v5  ;;  %v1563_v8 = vld [vmem:[#allocation5 + $0x8] sm:$0xff]  ;;  %1876 = vmatmul.msk.f32.gmra.mxu1 %vm440_vm0, %v1584_v42 }
 0x20f   : > { %1880 = vmatmul.msk.f32.gmra.mxu2 %vm1656_vm7, %v1563_v8  ;;  %1494 = vrot.lane.b32.xlu2 %v1471_v6, %s2879_s13 }
 0x211   : > { %1543 = vrot.lane.b32.xlu1 %v1520_v9, %s2035_s25 }
 0x212   : > { %v1192_v10 = vpop.permute.xlu1 %1191 }
 0x213   : > { %1213 = vst.msk [vmem:[#allocation5 + $0x18] sm:$0xff] %vm1209_vm14, %v1192_v10 }
 0x214   : > { %v1243_v11 = vpop.permute.xlu2 %1242  ;;  %1262 = vst.msk [vmem:[#allocation5 + $0x18] sm:$0xff] %vm1258_vm15, %v1241_v57 }
 0x216   : > { %1877 = vmatmul.msk.f32.gmra.mxu1 %vm440_vm0, %v1585_v45 }
 0x219   : > { %v1534_v12 = vpop.permute.xlu0 %1533 }
 0x21a   : > { %v1436_v13 = vpop.permute.xlu1 %1435 }
 0x21b   : > { %1458 = vst.msk [vmem:[#allocation5 + $0x10] sm:$0xff] %vm1455_vm4, %v1436_v13 }
 0x21c   : > { %v1536_v2 = vpop.permute.xlu2 %1535  ;;  %1507 = vst.msk [vmem:[#allocation5 + $0x10] sm:$0xff] %vm1504_vm5, %v1485_v62 }
 0x21d   : > { %1556 = vst.msk [vmem:[#allocation5 + $0x10] sm:$0xff] %vm1553_vm6, %v1534_v12 }
 0x21e   : > { %1878 = vmatmul.msk.f32.gmra.mxu1 %vm440_vm0, %v1586_v51 }
 0x221   : > { %v1290_v14 = vpop.permute.xlu0 %1289 }
 0x222   : > { %1311 = vst.msk [vmem:[#allocation5 + $0x18] sm:$0xff] %vm1307_vm1, %v1290_v14  ;;  %v1339_v15 = vpop.permute.xlu1 %1338 }
 0x223   : > { %1360 = vst.msk [vmem:[#allocation5 + $0x18] sm:$0xff] %vm1356_vm2, %v1339_v15 }
 0x224   : > { %1409 = vst.msk [vmem:[#allocation5 + $0x18] sm:$0xff] %vm1405_vm3, %v1388_v3  ;;  %v1564_v16 = vld [vmem:[#allocation5 + $0x10] sm:$0xff]  ;;  %v1390_v17 = vpop.permute.xlu2 %1389 }
 0x225   : > { %1881 = vmatmul.msk.f32.gmra.mxu2 %vm1656_vm7, %v1564_v16 }
 0x229   : > { %v1194_v18 = vpop.permute.xlu0 %1193 }
 0x22a   : > { %1214 = vst.msk [vmem:[#allocation5 + $0x20] sm:$0xff] %vm1209_vm14, %v1194_v18 }
 0x22b   : > { %1263 = vst.msk [vmem:[#allocation5 + $0x20] sm:$0xff] %vm1258_vm15, %v1243_v11  ;;  %v1487_v19 = vpop.permute.xlu1 %1486 }
 0x22c   : > { %v1538_v20 = vpop.permute.xlu2 %1537 }
 0x231   : > { %v1438_v21 = vpop.permute.xlu0 %1437 }
 0x232   : > { %1459 = vst.msk [vmem:[#allocation5 + $0x18] sm:$0xff] %vm1455_vm4, %v1438_v21 }
 0x233   : > { %1508 = vst.msk [vmem:[#allocation5 + $0x18] sm:$0xff] %vm1504_vm5, %v1487_v19  ;;  %v1292_v22 = vpop.permute.xlu1 %1291 }
 0x234   : > { %1557 = vst.msk [vmem:[#allocation5 + $0x18] sm:$0xff] %vm1553_vm6, %v1536_v2  ;;  %v1294_v23 = vpop.permute.xlu2 %1293 }
 0x235   : > { %1312 = vst.msk [vmem:[#allocation5 + $0x20] sm:$0xff] %vm1307_vm1, %v1292_v22 }
 0x239   : > { %v1341_v25 = vpop.permute.xlu0 %1340 }
 0x23a   : > { %1361 = vst.msk [vmem:[#allocation5 + $0x20] sm:$0xff] %vm1356_vm2, %v1341_v25 }
 0x23b   : > { %1410 = vst.msk [vmem:[#allocation5 + $0x20] sm:$0xff] %vm1405_vm3, %v1390_v17  ;;  %v1196_v28 = vpop.permute.xlu1 %1195  ;;  %v1565_v29 = vld [vmem:[#allocation5 + $0x18] sm:$0xff] }
 0x23c   : > { %1215 = vst.msk [vmem:[#allocation5 + $0x28] sm:$0xff] %vm1209_vm14, %v1196_v28  ;;  %1882 = vmatmul.msk.f32.gmra.mxu2 %vm1656_vm7, %v1565_v29 }
 0x241   : > { %v1245_v31 = vpop.permute.xlu0 %1244  ;;  %v1296_v32 = vpop.permute.xlu2 %1295 }
 0x242   : > { %1264 = vst.msk [vmem:[#allocation5 + $0x28] sm:$0xff] %vm1258_vm15, %v1245_v31 }
 0x243   : > { %1313 = vst.msk [vmem:[#allocation5 + $0x28] sm:$0xff] %vm1307_vm1, %v1294_v23  ;;  %v1198_v33 = vpop.permute.xlu1 %1197 }
 0x244   : > { %1216 = vst.msk [vmem:[#allocation5 + $0x30] sm:$0xff] %vm1209_vm14, %v1198_v33 }
 0x249   : > { %v1247_v34 = vpop.permute.xlu0 %1246  ;;  %v1200_v0 = vpop.permute.xlu2 %1199 }
 0x24a   : > { %1265 = vst.msk [vmem:[#allocation5 + $0x30] sm:$0xff] %vm1258_vm15, %v1247_v34 }
 0x24b   : > { %1314 = vst.msk [vmem:[#allocation5 + $0x30] sm:$0xff] %vm1307_vm1, %v1296_v32  ;;  %v1440_v35 = vpop.permute.xlu1 %1439 }
 0x24c   : > { %1217 = vst.msk [vmem:[#allocation5 + $0x38] sm:$0xff] %vm1209_vm14, %v1200_v0 }
 0x24d   : > { %1460 = vst.msk [vmem:[#allocation5 + $0x20] sm:$0xff] %vm1455_vm4, %v1440_v35 }
 0x251   : > { %v1489_v36 = vpop.permute.xlu0 %1488  ;;  %v1442_v38 = vpop.permute.xlu2 %1441 }
 0x252   : > { %1509 = vst.msk [vmem:[#allocation5 + $0x20] sm:$0xff] %vm1504_vm5, %v1489_v36 }
 0x253   : > { %1558 = vst.msk [vmem:[#allocation5 + $0x20] sm:$0xff] %vm1553_vm6, %v1538_v20  ;;  %v1343_v37 = vpop.permute.xlu1 %1342 }
 0x254   : > { %1362 = vst.msk [vmem:[#allocation5 + $0x28] sm:$0xff] %vm1356_vm2, %v1343_v37 }
 0x259   : > { %v1392_v39 = vpop.permute.xlu0 %1391  ;;  %v1444_v44 = vpop.permute.xlu2 %1443 }
 0x25a   : > { %1411 = vst.msk [vmem:[#allocation5 + $0x28] sm:$0xff] %vm1405_vm3, %v1392_v39  ;;  %v1566_v40 = vld [vmem:[#allocation5 + $0x20] sm:$0xff] }
 0x25b   : > { %1461 = vst.msk [vmem:[#allocation5 + $0x28] sm:$0xff] %vm1455_vm4, %v1442_v38  ;;  %1883 = vmatmul.msk.f32.gmra.mxu2 %vm1656_vm7, %v1566_v40  ;;  %v1345_v41 = vpop.permute.xlu1 %1344 }
 0x25c   : > { %1363 = vst.msk [vmem:[#allocation5 + $0x30] sm:$0xff] %vm1356_vm2, %v1345_v41 }
 0x261   : > { %v1394_v43 = vpop.permute.xlu0 %1393  ;;  %v1347_v52 = vpop.permute.xlu2 %1346 }
 0x262   : > { %1412 = vst.msk [vmem:[#allocation5 + $0x30] sm:$0xff] %vm1405_vm3, %v1394_v43 }
 0x263   : > { %1462 = vst.msk [vmem:[#allocation5 + $0x30] sm:$0xff] %vm1455_vm4, %v1444_v44  ;;  %v1249_v46 = vpop.permute.xlu1 %1248 }
 0x264   : > { %1266 = vst.msk [vmem:[#allocation5 + $0x38] sm:$0xff] %vm1258_vm15, %v1249_v46 }
 0x269   : > { %v1495_v56 = vpop.permute.xlu2 %1494 }
 0x26b   : > { %v1542_v47 = vpop.permute.xlu0 %1541  ;;  %v1491_v48 = vpop.permute.xlu1 %1490 }
 0x26c   : > { %1510 = vst.msk [vmem:[#allocation5 + $0x28] sm:$0xff] %vm1504_vm5, %v1491_v48  ;;  %v1635_v61 = vpop.f32.mrf.mxu1 }
 0x273   : > { %v1298_v49 = vpop.permute.xlu0 %1297  ;;  %v1493_v50 = vpop.permute.xlu1 %1492 }
 0x274   : > { %1315 = vst.msk [vmem:[#allocation5 + $0x38] sm:$0xff] %vm1307_vm1, %v1298_v49 }
 0x275   : > { %1364 = vst.msk [vmem:[#allocation5 + $0x38] sm:$0xff] %vm1356_vm2, %v1347_v52 }
 0x276   : > { %1511 = vst.msk [vmem:[#allocation5 + $0x30] sm:$0xff] %vm1504_vm5, %v1493_v50 }
 0x277   : > { %1560 = vst.msk [vmem:[#allocation5 + $0x30] sm:$0xff] %vm1553_vm6, %v1542_v47 }
 0x27b   : > { %v1698_v53 = vpop.f32.mrf.mxu2  ;;  %v1540_v27 = vpop.permute.xlu0 %1539 }
 0x27c   : > { %v1699_v54 = vadd.f32 %v1698_v53, %v1632_v26  ;;  %v1396_v55 = vpop.permute.xlu1 %1395  ;;  %1559 = vst.msk [vmem:[#allocation5 + $0x28] sm:$0xff] %vm1553_vm6, %v1540_v27 }
 0x27d   : > { %1413 = vst.msk [vmem:[#allocation5 + $0x38] sm:$0xff] %vm1405_vm3, %v1396_v55 }
 0x27e   : > { %1722 = vst.msk [vmem:[%s2799_s22] sm:$0xff] %vm1122_vm12, %v1699_v54  ;;  %v1568_v57 = vld [vmem:[#allocation5 + $0x30] sm:$0xff] }
 0x27f   : > { %1463 = vst.msk [vmem:[#allocation5 + $0x38] sm:$0xff] %vm1455_vm4, %v2675_v24  ;;  %1885 = vmatmul.msk.f32.vlgmr.msra.gmra.mxu3 %vm1656_vm7, %v1568_v57  ;;  %v1638_v24 = vpop.f32.mrf.mxu1 }
 0x280   : > { %1512 = vst.msk [vmem:[#allocation5 + $0x38] sm:$0xff] %vm1504_vm5, %v1495_v56 }
 0x283   : > { %v1567_v59 = vld [vmem:[#allocation5 + $0x28] sm:$0xff] }
 0x284   : > { %v1544_v58 = vpop.permute.xlu1 %1543  ;;  %1884 = vmatmul.msk.f32.gmra.mxu2 %vm1656_vm7, %v1567_v59 }
 0x285   : > { %1561 = vst.msk [vmem:[#allocation5 + $0x38] sm:$0xff] %vm1553_vm6, %v1544_v58 }
 0x287   : > { %v1641_v4 = vpop.f32.mrf.mxu1 }
 0x28c   : > { %v1569_v60 = vld [vmem:[#allocation5 + $0x38] sm:$0xff] }
 0x28d   : > { %1886 = vmatmul.msk.f32.gmra.mxu3 %vm1656_vm7, %v1569_v60 }
 0x28f   : > { %v1644_v8 = vpop.f32.mrf.mxu1 }
 0x292   : > { %v1701_v62 = vpop.f32.mrf.mxu2 }
 0x293   : > { %v1702_v63 = vadd.f32 %v1701_v62, %v1635_v61 }
 0x295   : > { %1723 = vst.msk [vmem:[%s2799_s22 + $0x8] sm:$0xff] %vm1122_vm12, %v1702_v63 }
 0x297   : > { %v1647_v11 = vpop.f32.mrf.mxu1 }
 0x29f   : > { %v1650_v12 = vpop.f32.mrf.mxu1 }
 0x2a7   : > { %v1653_v7 = vpop.f32.mrf.mxu1 }
 0x2a8   : > { %v1704_v1 = vpop.f32.mrf.mxu2 }
 0x2a9   : > { %v1705_v3 = vadd.f32 %v1704_v1, %v1638_v24 }
 0x2ab   : > { %1724 = vst.msk [vmem:[%s2799_s22 + $0x10] sm:$0xff] %vm1122_vm12, %v1705_v3 }
 0x2bf   : > { %v1707_v5 = vpop.f32.mrf.mxu2 }
 0x2c0   : > { %v1708_v6 = vadd.f32 %v1707_v5, %v1641_v4 }
 0x2c2   : > { %1725 = vst.msk [vmem:[%s2799_s22 + $0x18] sm:$0xff] %vm1122_vm12, %v1708_v6 }
 0x2de   : > { %v1710_v9 = vpop.f32.mrf.mxu2 }
 0x2df   : > { %v1711_v10 = vadd.f32 %v1710_v9, %v1644_v8 }
 0x2e1   : > { %1726 = vst.msk [vmem:[%s2799_s22 + $0x20] sm:$0xff] %vm1122_vm12, %v1711_v10 }
 0x302   : > { %v1716_v13 = vpop.f32.mrf.mxu3 }
 0x303   : > { %v1717_v2 = vadd.f32 %v1716_v13, %v1650_v12 }
 0x305   : > { %1728 = vst.msk [vmem:[%s2799_s22 + $0x30] sm:$0xff] %vm1122_vm12, %v1717_v2 }
 0x307   : > { %v1713_v14 = vpop.f32.mrf.mxu2 }
 0x308   : > { %v1714_v15 = vadd.f32 %v1713_v14, %v1647_v11 }
 0x30a   : > { %1727 = vst.msk [vmem:[%s2799_s22 + $0x28] sm:$0xff] %vm1122_vm12, %v1714_v15 }
 0x310   : > { %v1719_v16 = vpop.f32.mrf.mxu3 }
 0x311   : > { %v1720_v17 = vadd.f32 %v1719_v16, %v1653_v7 }
 0x313   : > { %1729 = vst.msk [vmem:[%s2799_s22 + $0x38] sm:$0xff] %vm1122_vm12, %v1720_v17 }
 0x314   : > { %1987 = shalt.err (!%p1984_p3)
}
 0x315   : > { %s2037_s19 = smov 128  }
 0x316   : > { %1903 = dma.vmem_to_hbm [thread:$0]  (%p2121_p5), %s1744_s26, 1024, %s1746_s21, %s1731_s12, %s2037_s19, %s2037_s19, %s2026_s10  }
 0x317 PF: > { %p1909_p4 = scmp.ge.s32.totalorder %s2022_s30, 2  ;;  %s1760_s22 = sand.u32 1, %s2010_s27  }
 0x318   : > { %s1761_s18 = scalar_lea.sflag [#allocation7], %s1760_s22 }
 0x319   : > { %p1906_p7 = pnand %p1909_p4, %p2125_p6 }
 0x31b   : > { %p1907_p8 = pneg %p1906_p7 }
 0x31d   : > { %2005 = dma.done.wait (%p1907_p8), %s1761_s18, 1024  }
 0x31e   : > { %2007 = vsyncadd (%p1907_p8), %s1761_s18, 4294966272  ;;  %p18_p9 = scmp.ge.s32.totalorder %s2108_s11, 4   ;;  %s2880_s27 = smov %s2014_s28 }
 0x31f   : > { %s2881_s28 = smov %s2018_s29  ;;  %s2882_s29 = smov %s2119_s14 }
 0x320   : > { %s2883_s30 = smov %s2108_s11  ;;  %20 = sbr.rel (!%p18_p9) target bundleno = 3 (0x3), region = 160 }
 0x325   :  { %1767 = vsyncpa [#allocation7], 1 }
 0x326   :  { %1769 = vsyncpa [#allocation7 + $0x1], 1 }

</bundles_post_ra>
